<compile_context>
chip_gen: v5e
topology: v5e:2x2
jax: 0.10.0
libtpu: 0.0.40
codegen_flags: <defaults>
</compile_context>

<pallas_src>
import numpy as np
import jax
import jax.numpy as jnp
from jax import lax
from jax.experimental import pallas as pl
from jax.experimental.pallas import tpu as pltpu

BN_EPS = 1e-5


def _round_up(x, m):
    return (x + m - 1) // m * m


# --------------------------------------------------------------------------
# Pallas kernel
# --------------------------------------------------------------------------
def make_block_kernel(conv_shifts, pool_shifts, pool_type, apply_bn_scale):
    """conv_shifts: list of 9 (lane_shift, needs_mask) for the 3x3 taps.
    pool_shifts: lane shifts of the pool-window offsets (first entry is 0).
    apply_bn_scale: True when the BN scale could NOT be folded into conv3."""

    def kernel(*refs):
        if apply_bn_scale:
            (x_ref, m_ref, w1_ref, b1_ref, w2_ref, b2_ref, w3_ref, b3_ref,
             bns_ref, bnb_ref, pmat_ref, rmat_ref, wid_ref, bid_ref,
             o_ref) = refs
        else:
            (x_ref, m_ref, w1_ref, b1_ref, w2_ref, b2_ref, w3_ref, b3_ref,
             bnb_ref, pmat_ref, rmat_ref, wid_ref, bid_ref, o_ref) = refs
            bns_ref = None

        f32 = jnp.float32
        bf16 = jnp.bfloat16
        x = x_ref[...]                      # (Cin_p, L)  f32, L = B_TILE*HW
        masks = m_ref[...]                  # (9, L)      f32 border masks

        def conv3x3_relu(h, w_ref, b_ref):
            # im2col: XLU lane rolls + VPU border masks, then ONE dense matmul.
            cols = []
            for k, (shift, needs_mask) in enumerate(conv_shifts):
                hk = h if shift == 0 else pltpu.roll(h, shift, axis=1)
                if needs_mask:
                    hk = hk * masks[k:k + 1]
                cols.append(hk)
            xcol = jnp.concatenate(cols, axis=0).astype(bf16)   # (9*Cin, L)
            out = jnp.dot(w_ref[...], xcol, preferred_element_type=f32)
            return jnp.maximum(out + b_ref[...], 0.0)           # bias + ReLU

        h = conv3x3_relu(x, w1_ref, b1_ref)                     # (Cout_p, L)
        h = conv3x3_relu(h, w2_ref, b2_ref)
        h = conv3x3_relu(h, w3_ref, b3_ref)

        # ---- pooling: combine the window into the window-base lanes (VPU/XLU),
        #      then compact the base lanes with one 0/1 matmul (avg factor folded).
        pooled_full = h
        for s in pool_shifts[1:]:
            hk = pltpu.roll(h, s, axis=1)
            pooled_full = (jnp.maximum(pooled_full, hk) if pool_type == "max"
                           else pooled_full + hk)
        pooled = jnp.dot(pooled_full.astype(bf16), pmat_ref[...],
                         preferred_element_type=f32)            # (Cout_p, Lp)

        # ---- BatchNorm (running stats); scale usually folded into conv3.
        #      Dropout = identity at inference.
        if apply_bn_scale:
            pooled = pooled * bns_ref[...]
        pooled = pooled + bnb_ref[...]

        # ---- skip: bilinear resize (host-folded matrix) + dense 1x1 conv ----
        idn = jnp.dot(x.astype(bf16), rmat_ref[...],
                      preferred_element_type=f32)               # (Cin_p, Lp)
        idn = jnp.dot(wid_ref[...], idn.astype(bf16),
                      preferred_element_type=f32)               # (Cout_p, Lp)

        o_ref[...] = pooled + idn + bid_ref[...]

    return kernel


# --------------------------------------------------------------------------
# Host-side constant folding (all data-independent work happens here)
# --------------------------------------------------------------------------
def _conv_shifts(H, W, L):
    """Lane-roll amount (jnp.roll convention) and mask flag per 3x3 tap."""
    out = []
    for ky in range(3):
        for kx in range(3):
            d = (ky - 1) * W + (kx - 1)         # read lane p + d
            out.append(((-d) % L, not (ky == 1 and kx == 1)))
    return out


def _pool_shifts(W, ph, pw, L):
    return [(-(dy * W + dx)) % L for dy in range(ph) for dx in range(pw)]


def _conv_masks(H, W, b_tile):
    """(9, b_tile*HW) 0/1 masks: tap k valid at output pixel p (pad=1 conv)."""
    HW = H * W
    p = np.arange(HW)
    h, w = p // W, p % W
    m = np.zeros((9, HW), np.float32)
    k = 0
    for ky in range(3):
        for kx in range(3):
            hi, wi = h + ky - 1, w + kx - 1
            m[k] = ((hi >= 0) & (hi < H) & (wi >= 0) & (wi < W)).astype(np.float32)
            k += 1
    return np.tile(m, (1, b_tile))              # lanes are batch-major (b*HW+p)


def _pool_compact_matrix(H, W, ph, pw, b_tile, pool_type):
    """(b*HW, b*HWp) selection picking the pool-window base lanes (avg folded)."""
    H2, W2 = H // ph, W // pw
    HW, HWp = H * W, H2 * W2
    D = np.zeros((HW, HWp), np.float32)
    q = np.arange(HWp)
    h2, w2 = q // W2, q % W2
    val = 1.0 if pool_type == "max" else 1.0 / (ph * pw)
    D[(h2 * ph) * W + (w2 * pw), q] = val
    return np.kron(np.eye(b_tile, dtype=np.float32), D)


def _bilinear_matrix_1d(n_in, n_out):
    # F.interpolate(mode='bilinear', align_corners=False) 1-D weights.
    scale = n_in / n_out
    i = np.arange(n_out)
    src = np.maximum((i + 0.5) * scale - 0.5, 0.0)
    i0 = np.minimum(np.floor(src).astype(np.int64), n_in - 1)
    i1 = np.minimum(i0 + 1, n_in - 1)
    frac = src - i0
    Wm = np.zeros((n_in, n_out), np.float32)
    Wm[i0, i] += (1.0 - frac)
    Wm[i1, i] += frac
    return Wm


def _resize_matrix(H, W, H2, W2):
    Wh = _bilinear_matrix_1d(H, H2)
    Ww = _bilinear_matrix_1d(W, W2)
    return np.einsum("ab,cd->acbd", Wh, Ww).reshape(H * W, H2 * W2).astype(np.float32)


def _conv_weight(w, cin_p, cout_p):
    """(Cout,Cin,3,3) -> dense (Cout_p, 9*Cin_p), tap-major then channel."""
    co, ci = w.shape[0], w.shape[1]
    wp = jnp.zeros((cout_p, cin_p, 3, 3), jnp.float32)
    wp = wp.at[:co, :ci].set(w.astype(jnp.float32))
    return jnp.transpose(wp, (0, 2, 3, 1)).reshape(cout_p, 9 * cin_p)


def _col(v, cout_p, fill=0.0):
    out = jnp.full((cout_p,), fill, jnp.float32).at[:v.shape[0]].set(
        v.astype(jnp.float32))
    return out.reshape(-1, 1)


# --------------------------------------------------------------------------
# Wrapper
# --------------------------------------------------------------------------
def block_forward(x_nchw, params, pool_type="max", pool_size=(2, 2)):
    # NOTE: not meant to be jit-wrapped as a whole (the BN-fold guard needs
    # concrete parameter values); the Pallas call itself is the compiled part.
    x_nchw = x_nchw.astype(jnp.float32)
    B, Cin, H, W = x_nchw.shape
    Cout = params["w1"].shape[0]
    ph, pw = pool_size
    H2, W2 = H // ph, W // pw
    HW, HWp = H * W, H2 * W2

    Cin_p = _round_up(Cin, 8)        # keep im2col taps sublane-aligned
    Cout_p = _round_up(Cout, 8)

    # Batch-on-lanes tiling: each grid step processes B_TILE images stacked
    # along the lane axis (target ~1024 lanes per step).
    B_TILE = max(1, min(B, max(1, 1024 // HW)))
    # v7x has 2 TensorCores: prefer >=2 grid steps if that keeps >=512 lanes
    # per step; otherwise favour lane fill (v5e/v6e are single-TC).
    while (B_TILE > 1 and (B + B_TILE - 1) // B_TILE < 2
           and (B_TILE // 2) * HW >= 512):
        B_TILE //= 2
    pad_b = (-B) % B_TILE
    Bp = B + pad_b
    n_tiles = Bp // B_TILE
    L = B_TILE * HW                  # lane width of activation tiles
    Lp = B_TILE * HWp                # lane width of the (lane-dense) output

    if pad_b:
        x_nchw = jnp.concatenate(
            [x_nchw, jnp.zeros((pad_b, Cin, H, W), jnp.float32)], axis=0)
    if Cin_p != Cin:
        x_nchw = jnp.concatenate(
            [x_nchw, jnp.zeros((Bp, Cin_p - Cin, H, W), jnp.float32)], axis=1)
    # (Bp, Cin_p, H, W) -> (n_tiles*Cin_p, B_TILE*HW), lanes batch-major.
    x_lanes = (x_nchw.reshape(n_tiles, B_TILE, Cin_p, HW)
               .transpose(0, 2, 1, 3)
               .reshape(n_tiles * Cin_p, L))

    # -------- host-side constants (all tiny) --------
    bf16 = jnp.bfloat16
    conv_shifts = _conv_shifts(H, W, L)
    pool_shifts = _pool_shifts(W, ph, pw, L)
    masks = jnp.asarray(_conv_masks(H, W, B_TILE))                  # (9, L) f32

    gamma, beta, mean, var = params["bn"]
    scale = gamma / jnp.sqrt(var + BN_EPS)
    shift = beta - mean * scale
    # Fold BN scale into conv3 when positive for every channel (ReLU and
    # max/avg pool commute with a positive per-channel scale).
    fold_bn_scale = bool(np.all(np.asarray(scale) > 0.0))
    w3, b3 = params["w3"], params["b3"]
    if fold_bn_scale:
        w3 = w3 * scale[:, None, None, None]
        b3 = b3 * scale

    w1c = _conv_weight(params["w1"], Cin_p, Cout_p).astype(bf16)
    w2c = _conv_weight(params["w2"], Cout_p, Cout_p).astype(bf16)
    w3c = _conv_weight(w3, Cout_p, Cout_p).astype(bf16)
    b1r = _col(params["b1"], Cout_p)
    b2r = _col(params["b2"], Cout_p)
    b3r = _col(b3, Cout_p)
    bnb = _col(shift, Cout_p)
    bns = _col(scale, Cout_p, fill=1.0)          # only used when not folded

    pmat = jnp.asarray(
        _pool_compact_matrix(H, W, ph, pw, B_TILE, pool_type)).astype(bf16)

    if (Cin != Cout) or (H2 != H) or (W2 != W):
        rmat = jnp.asarray(np.kron(np.eye(B_TILE, dtype=np.float32),
                                   _resize_matrix(H, W, H2, W2))).astype(bf16)
        wid = jnp.zeros((Cout_p, Cin_p), jnp.float32).at[:Cout, :Cin].set(
            params["w1x1"][:, :, 0, 0].astype(jnp.float32)).astype(bf16)
        bid = _col(params["b1x1"], Cout_p)
    else:  # identity skip (shapes match): pass x straight through
        rmat = jnp.asarray(np.kron(np.eye(B_TILE, dtype=np.float32),
                                   np.eye(HW, dtype=np.float32))).astype(bf16)
        wid = jnp.eye(Cout_p, Cin_p, dtype=jnp.float32).astype(bf16)
        bid = jnp.zeros((Cout_p, 1), jnp.float32)

    kernel = make_block_kernel(conv_shifts, pool_shifts, pool_type,
                               apply_bn_scale=not fold_bn_scale)

    def const_spec(arr):
        return pl.BlockSpec(arr.shape, lambda b: (0,) * arr.ndim)

    in_specs = [pl.BlockSpec((Cin_p, L), lambda b: (b, 0)),   # x (batch tile)
                const_spec(masks),
                const_spec(w1c), const_spec(b1r),
                const_spec(w2c), const_spec(b2r),
                const_spec(w3c), const_spec(b3r)]
    args = [x_lanes, masks, w1c, b1r, w2c, b2r, w3c, b3r]
    if not fold_bn_scale:
        in_specs.append(const_spec(bns))
        args.append(bns)
    in_specs += [const_spec(bnb), const_spec(pmat), const_spec(rmat),
                 const_spec(wid), const_spec(bid)]
    args += [bnb, pmat, rmat, wid, bid]

    out = pl.pallas_call(
        kernel,
        out_shape=jax.ShapeDtypeStruct((n_tiles * Cout_p, Lp), jnp.float32),
        grid=(n_tiles,),
        in_specs=in_specs,
        out_specs=pl.BlockSpec((Cout_p, Lp), lambda b: (b, 0)),
        compiler_params=pltpu.CompilerParams(
            dimension_semantics=("parallel",),
            vmem_limit_bytes=32 * 1024 * 1024),
    )(*args)

    out = (out.reshape(n_tiles, Cout_p, B_TILE, HWp)
           .transpose(0, 2, 1, 3)
           .reshape(Bp, Cout_p, H2, W2))
    return out[:B, :Cout]


# --------------------------------------------------------------------------
# Deterministic synthetic parameters
# --------------------------------------------------------------------------
def init_params(key, cin, cout):
    ks = jax.random.split(key, 12)

    def cw(k, co, ci, kh, kw, s):
        return s * jax.random.normal(k, (co, ci, kh, kw), jnp.float32)

    gamma = 1.0 + 0.1 * jax.random.normal(ks[8], (cout,), jnp.float32)
    beta = 0.1 * jax.random.normal(ks[9], (cout,), jnp.float32)
    mean = 0.1 * jax.random.normal(ks[10], (cout,), jnp.float32)
    var = 0.5 + jax.random.uniform(ks[11], (cout,), jnp.float32)
    return dict(
        w1=cw(ks[0], cout, cin, 3, 3, 0.25),
        b1=0.1 * jax.random.normal(ks[1], (cout,), jnp.float32),
        w2=cw(ks[2], cout, cout, 3, 3, 0.15),
        b2=0.1 * jax.random.normal(ks[3], (cout,), jnp.float32),
        w3=cw(ks[4], cout, cout, 3, 3, 0.15),
        b3=0.1 * jax.random.normal(ks[5], (cout,), jnp.float32),
        w1x1=cw(ks[6], cout, cin, 1, 1, 0.3),
        b1x1=0.1 * jax.random.normal(ks[7], (cout,), jnp.float32),
        bn=(gamma, beta, mean, var),
    )


# --------------------------------------------------------------------------
# Pure-JAX reference (inference semantics), independent of the kernel math
# --------------------------------------------------------------------------
def _bilinear_resize_ref(x, H2, W2):
    B, C, H, W = x.shape
    sh, sw = H / H2, W / W2
    hs = jnp.maximum((jnp.arange(H2) + 0.5) * sh - 0.5, 0.0)
    ws = jnp.maximum((jnp.arange(W2) + 0.5) * sw - 0.5, 0.0)
    h0 = jnp.clip(jnp.floor(hs).astype(jnp.int32), 0, H - 1)
    w0 = jnp.clip(jnp.floor(ws).astype(jnp.int32), 0, W - 1)
    h1 = jnp.minimum(h0 + 1, H - 1)
    w1 = jnp.minimum(w0 + 1, W - 1)
    fh = (hs - h0)[None, None, :, None]
    fw = (ws - w0)[None, None, None, :]
    g = lambda hh, ww: x[:, :, hh, :][:, :, :, ww]
    top = g(h0, w0) * (1 - fw) + g(h0, w1) * fw
    bot = g(h1, w0) * (1 - fw) + g(h1, w1) * fw
    return top * (1 - fh) + bot * fh


def reference_forward(x, params, pool_type="max", pool_size=(2, 2)):
    hp = lax.Precision.HIGHEST
    dn = ("NCHW", "OIHW", "NCHW")

    def conv(h, w, b, pad):
        out = lax.conv_general_dilated(h, w, (1, 1), [(pad, pad), (pad, pad)],
                                       dimension_numbers=dn, precision=hp)
        return out + b[None, :, None, None]

    h = jax.nn.relu(conv(x, params["w1"], params["b1"], 1))
    h = jax.nn.relu(conv(h, params["w2"], params["b2"], 1))
    h = jax.nn.relu(conv(h, params["w3"], params["b3"], 1))

    ph, pw = pool_size
    if pool_type == "max":
        h = lax.reduce_window(h, -jnp.inf, lax.max,
                              (1, 1, ph, pw), (1, 1, ph, pw), "VALID")
    else:
        h = lax.reduce_window(h, 0.0, lax.add,
                              (1, 1, ph, pw), (1, 1, ph, pw), "VALID") / (ph * pw)

    gamma, beta, mean, var = params["bn"]
    s = gamma / jnp.sqrt(var + BN_EPS)
    h = h * s[None, :, None, None] + (beta - mean * s)[None, :, None, None]
    # dropout: identity at inference

    iden = x
    if iden.shape != h.shape:
        iden = _bilinear_resize_ref(iden, h.shape[2], h.shape[3])
        iden = conv(iden, params["w1x1"], params["b1x1"], 0)
    return h + iden


if __name__ == "__main__":
    key = jax.random.PRNGKey(0)
    kx, kp = jax.random.split(key)
    B, Cin, H, W = 2, 4, 16, 16
    Cout = 8

    x = jax.random.normal(kx, (B, Cin, H, W), jnp.float32)
    params = init_params(kp, Cin, Cout)

    out = block_forward(x, params, pool_type="max", pool_size=(2, 2))
    out = jax.block_until_ready(out)
    assert out.shape == (B, Cout, H // 2, W // 2), out.shape

    ref = reference_forward(x, params, pool_type="max", pool_size=(2, 2))
    err = float(jnp.max(jnp.abs(out - ref)))
    # bf16 MXU operands (f32 accumulation) -> ~1e-2-level agreement w/ f32 ref.
    assert jnp.allclose(out, ref, atol=5e-2, rtol=5e-2), err

    print("KERNEL_OK")
</pallas_src>

<mosaic_0001>
module attributes {stable_mosaic.version = 11 : i64} {
  func.func @kernel(%arg0: i32, %arg1: memref<8x512xf32, #tpu.memory_space<vmem>>, %arg2: memref<9x512xf32, #tpu.memory_space<vmem>>, %arg3: memref<8x72xbf16, #tpu.memory_space<vmem>>, %arg4: memref<8x1xf32, #tpu.memory_space<vmem>>, %arg5: memref<8x72xbf16, #tpu.memory_space<vmem>>, %arg6: memref<8x1xf32, #tpu.memory_space<vmem>>, %arg7: memref<8x72xbf16, #tpu.memory_space<vmem>>, %arg8: memref<8x1xf32, #tpu.memory_space<vmem>>, %arg9: memref<8x1xf32, #tpu.memory_space<vmem>>, %arg10: memref<512x128xbf16, #tpu.memory_space<vmem>>, %arg11: memref<512x128xbf16, #tpu.memory_space<vmem>>, %arg12: memref<8x8xbf16, #tpu.memory_space<vmem>>, %arg13: memref<8x1xf32, #tpu.memory_space<vmem>>, %arg14: memref<8x128xf32, #tpu.memory_space<vmem>>) attributes {dimension_semantics = [#tpu.dimension_semantics<parallel>], iteration_bounds = array<i64: 1>, scalar_prefetch = 0 : i64, scratch_operands = 0 : i64, tpu.core_type = #tpu.core_type<tc>, window_params = [{transform_indices = @transform_0, window_bounds = array<i64: 8, 512>}, {pipeline_mode = #tpu.pipeline_mode<synchronous>, transform_indices = @transform_1, window_bounds = array<i64: 9, 512>}, {pipeline_mode = #tpu.pipeline_mode<synchronous>, transform_indices = @transform_2, window_bounds = array<i64: 8, 72>}, {pipeline_mode = #tpu.pipeline_mode<synchronous>, transform_indices = @transform_3, window_bounds = array<i64: 8, 1>}, {pipeline_mode = #tpu.pipeline_mode<synchronous>, transform_indices = @transform_4, window_bounds = array<i64: 8, 72>}, {pipeline_mode = #tpu.pipeline_mode<synchronous>, transform_indices = @transform_5, window_bounds = array<i64: 8, 1>}, {pipeline_mode = #tpu.pipeline_mode<synchronous>, transform_indices = @transform_6, window_bounds = array<i64: 8, 72>}, {pipeline_mode = #tpu.pipeline_mode<synchronous>, transform_indices = @transform_7, window_bounds = array<i64: 8, 1>}, {pipeline_mode = #tpu.pipeline_mode<synchronous>, transform_indices = @transform_8, window_bounds = array<i64: 8, 1>}, {pipeline_mode = #tpu.pipeline_mode<synchronous>, transform_indices = @transform_9, window_bounds = array<i64: 512, 128>}, {pipeline_mode = #tpu.pipeline_mode<synchronous>, transform_indices = @transform_10, window_bounds = array<i64: 512, 128>}, {pipeline_mode = #tpu.pipeline_mode<synchronous>, transform_indices = @transform_11, window_bounds = array<i64: 8, 8>}, {pipeline_mode = #tpu.pipeline_mode<synchronous>, transform_indices = @transform_12, window_bounds = array<i64: 8, 1>}, {transform_indices = @transform_13, window_bounds = array<i64: 8, 128>}]} {
    %c0 = arith.constant 0 : index
    %c0_0 = arith.constant 0 : index
    %0 = vector.load %arg1[%c0, %c0_0] : memref<8x512xf32, #tpu.memory_space<vmem>>, vector<8x512xf32>
    %c0_1 = arith.constant 0 : index
    %c0_2 = arith.constant 0 : index
    %1 = vector.load %arg2[%c0_1, %c0_2] : memref<9x512xf32, #tpu.memory_space<vmem>>, vector<9x512xf32>
    %c17_i32 = arith.constant 17 : i32
    %2 = tpu.dynamic_rotate %0 by %c17_i32 dim 1 : vector<8x512xf32>, i32 -> vector<8x512xf32>
    %3 = vector.extract_strided_slice %1 {offsets = [0, 0], sizes = [1, 512], strides = [1, 1]} : vector<9x512xf32> to vector<1x512xf32>
    %4 = vector.broadcast %3 : vector<1x512xf32> to vector<8x512xf32>
    %5 = arith.mulf %2, %4 : vector<8x512xf32>
    %c16_i32 = arith.constant 16 : i32
    %6 = tpu.dynamic_rotate %0 by %c16_i32 dim 1 : vector<8x512xf32>, i32 -> vector<8x512xf32>
    %7 = vector.extract_strided_slice %1 {offsets = [1, 0], sizes = [1, 512], strides = [1, 1]} : vector<9x512xf32> to vector<1x512xf32>
    %8 = vector.broadcast %7 : vector<1x512xf32> to vector<8x512xf32>
    %9 = arith.mulf %6, %8 : vector<8x512xf32>
    %c15_i32 = arith.constant 15 : i32
    %10 = tpu.dynamic_rotate %0 by %c15_i32 dim 1 : vector<8x512xf32>, i32 -> vector<8x512xf32>
    %11 = vector.extract_strided_slice %1 {offsets = [2, 0], sizes = [1, 512], strides = [1, 1]} : vector<9x512xf32> to vector<1x512xf32>
    %12 = vector.broadcast %11 : vector<1x512xf32> to vector<8x512xf32>
    %13 = arith.mulf %10, %12 : vector<8x512xf32>
    %c1_i32 = arith.constant 1 : i32
    %14 = tpu.dynamic_rotate %0 by %c1_i32 dim 1 : vector<8x512xf32>, i32 -> vector<8x512xf32>
    %15 = vector.extract_strided_slice %1 {offsets = [3, 0], sizes = [1, 512], strides = [1, 1]} : vector<9x512xf32> to vector<1x512xf32>
    %16 = vector.broadcast %15 : vector<1x512xf32> to vector<8x512xf32>
    %17 = arith.mulf %14, %16 : vector<8x512xf32>
    %c511_i32 = arith.constant 511 : i32
    %18 = tpu.dynamic_rotate %0 by %c511_i32 dim 1 : vector<8x512xf32>, i32 -> vector<8x512xf32>
    %19 = vector.extract_strided_slice %1 {offsets = [5, 0], sizes = [1, 512], strides = [1, 1]} : vector<9x512xf32> to vector<1x512xf32>
    %20 = vector.broadcast %19 : vector<1x512xf32> to vector<8x512xf32>
    %21 = arith.mulf %18, %20 : vector<8x512xf32>
    %c497_i32 = arith.constant 497 : i32
    %22 = tpu.dynamic_rotate %0 by %c497_i32 dim 1 : vector<8x512xf32>, i32 -> vector<8x512xf32>
    %23 = vector.extract_strided_slice %1 {offsets = [6, 0], sizes = [1, 512], strides = [1, 1]} : vector<9x512xf32> to vector<1x512xf32>
    %24 = vector.broadcast %23 : vector<1x512xf32> to vector<8x512xf32>
    %25 = arith.mulf %22, %24 : vector<8x512xf32>
    %c496_i32 = arith.constant 496 : i32
    %26 = tpu.dynamic_rotate %0 by %c496_i32 dim 1 : vector<8x512xf32>, i32 -> vector<8x512xf32>
    %27 = vector.extract_strided_slice %1 {offsets = [7, 0], sizes = [1, 512], strides = [1, 1]} : vector<9x512xf32> to vector<1x512xf32>
    %28 = vector.broadcast %27 : vector<1x512xf32> to vector<8x512xf32>
    %29 = arith.mulf %26, %28 : vector<8x512xf32>
    %c495_i32 = arith.constant 495 : i32
    %30 = tpu.dynamic_rotate %0 by %c495_i32 dim 1 : vector<8x512xf32>, i32 -> vector<8x512xf32>
    %31 = vector.extract_strided_slice %1 {offsets = [8, 0], sizes = [1, 512], strides = [1, 1]} : vector<9x512xf32> to vector<1x512xf32>
    %32 = vector.broadcast %31 : vector<1x512xf32> to vector<8x512xf32>
    %33 = arith.mulf %30, %32 : vector<8x512xf32>
    %34 = tpu.concatenate %5, %9, %13, %17, %0, %21, %25, %29, %33 in 0 : vector<8x512xf32>, vector<8x512xf32>, vector<8x512xf32>, vector<8x512xf32>, vector<8x512xf32>, vector<8x512xf32>, vector<8x512xf32>, vector<8x512xf32>, vector<8x512xf32> -> vector<72x512xf32>
    %35 = arith.truncf %34 : vector<72x512xf32> to vector<72x512xbf16>
    %c0_3 = arith.constant 0 : index
    %c0_4 = arith.constant 0 : index
    %36 = vector.load %arg3[%c0_3, %c0_4] : memref<8x72xbf16, #tpu.memory_space<vmem>>, vector<8x72xbf16>
    %cst = arith.constant dense<0.000000e+00> : vector<8x512xf32>
    %37 = tpu.matmul %36, %35, %cst {dimension_numbers = #tpu.dot_dimension_numbers<[1], [0], [0], [1], [0, 0, 1, 1], [], []>} : vector<8x72xbf16>, vector<72x512xbf16>, vector<8x512xf32> -> vector<8x512xf32>
    %c0_5 = arith.constant 0 : index
    %c0_6 = arith.constant 0 : index
    %38 = vector.load %arg4[%c0_5, %c0_6] : memref<8x1xf32, #tpu.memory_space<vmem>>, vector<8x1xf32>
    %39 = vector.broadcast %38 : vector<8x1xf32> to vector<8x512xf32>
    %40 = arith.addf %37, %39 : vector<8x512xf32>
    %cst_7 = arith.constant 0.000000e+00 : f32
    %41 = vector.broadcast %cst_7 : f32 to vector<8x512xf32>
    %42 = arith.maximumf %40, %41 : vector<8x512xf32>
    %c17_i32_8 = arith.constant 17 : i32
    %43 = tpu.dynamic_rotate %42 by %c17_i32_8 dim 1 : vector<8x512xf32>, i32 -> vector<8x512xf32>
    %44 = vector.extract_strided_slice %1 {offsets = [0, 0], sizes = [1, 512], strides = [1, 1]} : vector<9x512xf32> to vector<1x512xf32>
    %45 = vector.broadcast %44 : vector<1x512xf32> to vector<8x512xf32>
    %46 = arith.mulf %43, %45 : vector<8x512xf32>
    %c16_i32_9 = arith.constant 16 : i32
    %47 = tpu.dynamic_rotate %42 by %c16_i32_9 dim 1 : vector<8x512xf32>, i32 -> vector<8x512xf32>
    %48 = vector.extract_strided_slice %1 {offsets = [1, 0], sizes = [1, 512], strides = [1, 1]} : vector<9x512xf32> to vector<1x512xf32>
    %49 = vector.broadcast %48 : vector<1x512xf32> to vector<8x512xf32>
    %50 = arith.mulf %47, %49 : vector<8x512xf32>
    %c15_i32_10 = arith.constant 15 : i32
    %51 = tpu.dynamic_rotate %42 by %c15_i32_10 dim 1 : vector<8x512xf32>, i32 -> vector<8x512xf32>
    %52 = vector.extract_strided_slice %1 {offsets = [2, 0], sizes = [1, 512], strides = [1, 1]} : vector<9x512xf32> to vector<1x512xf32>
    %53 = vector.broadcast %52 : vector<1x512xf32> to vector<8x512xf32>
    %54 = arith.mulf %51, %53 : vector<8x512xf32>
    %c1_i32_11 = arith.constant 1 : i32
    %55 = tpu.dynamic_rotate %42 by %c1_i32_11 dim 1 : vector<8x512xf32>, i32 -> vector<8x512xf32>
    %56 = vector.extract_strided_slice %1 {offsets = [3, 0], sizes = [1, 512], strides = [1, 1]} : vector<9x512xf32> to vector<1x512xf32>
    %57 = vector.broadcast %56 : vector<1x512xf32> to vector<8x512xf32>
    %58 = arith.mulf %55, %57 : vector<8x512xf32>
    %c511_i32_12 = arith.constant 511 : i32
    %59 = tpu.dynamic_rotate %42 by %c511_i32_12 dim 1 : vector<8x512xf32>, i32 -> vector<8x512xf32>
    %60 = vector.extract_strided_slice %1 {offsets = [5, 0], sizes = [1, 512], strides = [1, 1]} : vector<9x512xf32> to vector<1x512xf32>
    %61 = vector.broadcast %60 : vector<1x512xf32> to vector<8x512xf32>
    %62 = arith.mulf %59, %61 : vector<8x512xf32>
    %c497_i32_13 = arith.constant 497 : i32
    %63 = tpu.dynamic_rotate %42 by %c497_i32_13 dim 1 : vector<8x512xf32>, i32 -> vector<8x512xf32>
    %64 = vector.extract_strided_slice %1 {offsets = [6, 0], sizes = [1, 512], strides = [1, 1]} : vector<9x512xf32> to vector<1x512xf32>
    %65 = vector.broadcast %64 : vector<1x512xf32> to vector<8x512xf32>
    %66 = arith.mulf %63, %65 : vector<8x512xf32>
    %c496_i32_14 = arith.constant 496 : i32
    %67 = tpu.dynamic_rotate %42 by %c496_i32_14 dim 1 : vector<8x512xf32>, i32 -> vector<8x512xf32>
    %68 = vector.extract_strided_slice %1 {offsets = [7, 0], sizes = [1, 512], strides = [1, 1]} : vector<9x512xf32> to vector<1x512xf32>
    %69 = vector.broadcast %68 : vector<1x512xf32> to vector<8x512xf32>
    %70 = arith.mulf %67, %69 : vector<8x512xf32>
    %c495_i32_15 = arith.constant 495 : i32
    %71 = tpu.dynamic_rotate %42 by %c495_i32_15 dim 1 : vector<8x512xf32>, i32 -> vector<8x512xf32>
    %72 = vector.extract_strided_slice %1 {offsets = [8, 0], sizes = [1, 512], strides = [1, 1]} : vector<9x512xf32> to vector<1x512xf32>
    %73 = vector.broadcast %72 : vector<1x512xf32> to vector<8x512xf32>
    %74 = arith.mulf %71, %73 : vector<8x512xf32>
    %75 = tpu.concatenate %46, %50, %54, %58, %42, %62, %66, %70, %74 in 0 : vector<8x512xf32>, vector<8x512xf32>, vector<8x512xf32>, vector<8x512xf32>, vector<8x512xf32>, vector<8x512xf32>, vector<8x512xf32>, vector<8x512xf32>, vector<8x512xf32> -> vector<72x512xf32>
    %76 = arith.truncf %75 : vector<72x512xf32> to vector<72x512xbf16>
    %c0_16 = arith.constant 0 : index
    %c0_17 = arith.constant 0 : index
    %77 = vector.load %arg5[%c0_16, %c0_17] : memref<8x72xbf16, #tpu.memory_space<vmem>>, vector<8x72xbf16>
    %cst_18 = arith.constant dense<0.000000e+00> : vector<8x512xf32>
    %78 = tpu.matmul %77, %76, %cst_18 {dimension_numbers = #tpu.dot_dimension_numbers<[1], [0], [0], [1], [0, 0, 1, 1], [], []>} : vector<8x72xbf16>, vector<72x512xbf16>, vector<8x512xf32> -> vector<8x512xf32>
    %c0_19 = arith.constant 0 : index
    %c0_20 = arith.constant 0 : index
    %79 = vector.load %arg6[%c0_19, %c0_20] : memref<8x1xf32, #tpu.memory_space<vmem>>, vector<8x1xf32>
    %80 = vector.broadcast %79 : vector<8x1xf32> to vector<8x512xf32>
    %81 = arith.addf %78, %80 : vector<8x512xf32>
    %cst_21 = arith.constant 0.000000e+00 : f32
    %82 = vector.broadcast %cst_21 : f32 to vector<8x512xf32>
    %83 = arith.maximumf %81, %82 : vector<8x512xf32>
    %c17_i32_22 = arith.constant 17 : i32
    %84 = tpu.dynamic_rotate %83 by %c17_i32_22 dim 1 : vector<8x512xf32>, i32 -> vector<8x512xf32>
    %85 = vector.extract_strided_slice %1 {offsets = [0, 0], sizes = [1, 512], strides = [1, 1]} : vector<9x512xf32> to vector<1x512xf32>
    %86 = vector.broadcast %85 : vector<1x512xf32> to vector<8x512xf32>
    %87 = arith.mulf %84, %86 : vector<8x512xf32>
    %c16_i32_23 = arith.constant 16 : i32
    %88 = tpu.dynamic_rotate %83 by %c16_i32_23 dim 1 : vector<8x512xf32>, i32 -> vector<8x512xf32>
    %89 = vector.extract_strided_slice %1 {offsets = [1, 0], sizes = [1, 512], strides = [1, 1]} : vector<9x512xf32> to vector<1x512xf32>
    %90 = vector.broadcast %89 : vector<1x512xf32> to vector<8x512xf32>
    %91 = arith.mulf %88, %90 : vector<8x512xf32>
    %c15_i32_24 = arith.constant 15 : i32
    %92 = tpu.dynamic_rotate %83 by %c15_i32_24 dim 1 : vector<8x512xf32>, i32 -> vector<8x512xf32>
    %93 = vector.extract_strided_slice %1 {offsets = [2, 0], sizes = [1, 512], strides = [1, 1]} : vector<9x512xf32> to vector<1x512xf32>
    %94 = vector.broadcast %93 : vector<1x512xf32> to vector<8x512xf32>
    %95 = arith.mulf %92, %94 : vector<8x512xf32>
    %c1_i32_25 = arith.constant 1 : i32
    %96 = tpu.dynamic_rotate %83 by %c1_i32_25 dim 1 : vector<8x512xf32>, i32 -> vector<8x512xf32>
    %97 = vector.extract_strided_slice %1 {offsets = [3, 0], sizes = [1, 512], strides = [1, 1]} : vector<9x512xf32> to vector<1x512xf32>
    %98 = vector.broadcast %97 : vector<1x512xf32> to vector<8x512xf32>
    %99 = arith.mulf %96, %98 : vector<8x512xf32>
    %c511_i32_26 = arith.constant 511 : i32
    %100 = tpu.dynamic_rotate %83 by %c511_i32_26 dim 1 : vector<8x512xf32>, i32 -> vector<8x512xf32>
    %101 = vector.extract_strided_slice %1 {offsets = [5, 0], sizes = [1, 512], strides = [1, 1]} : vector<9x512xf32> to vector<1x512xf32>
    %102 = vector.broadcast %101 : vector<1x512xf32> to vector<8x512xf32>
    %103 = arith.mulf %100, %102 : vector<8x512xf32>
    %c497_i32_27 = arith.constant 497 : i32
    %104 = tpu.dynamic_rotate %83 by %c497_i32_27 dim 1 : vector<8x512xf32>, i32 -> vector<8x512xf32>
    %105 = vector.extract_strided_slice %1 {offsets = [6, 0], sizes = [1, 512], strides = [1, 1]} : vector<9x512xf32> to vector<1x512xf32>
    %106 = vector.broadcast %105 : vector<1x512xf32> to vector<8x512xf32>
    %107 = arith.mulf %104, %106 : vector<8x512xf32>
    %c496_i32_28 = arith.constant 496 : i32
    %108 = tpu.dynamic_rotate %83 by %c496_i32_28 dim 1 : vector<8x512xf32>, i32 -> vector<8x512xf32>
    %109 = vector.extract_strided_slice %1 {offsets = [7, 0], sizes = [1, 512], strides = [1, 1]} : vector<9x512xf32> to vector<1x512xf32>
    %110 = vector.broadcast %109 : vector<1x512xf32> to vector<8x512xf32>
    %111 = arith.mulf %108, %110 : vector<8x512xf32>
    %c495_i32_29 = arith.constant 495 : i32
    %112 = tpu.dynamic_rotate %83 by %c495_i32_29 dim 1 : vector<8x512xf32>, i32 -> vector<8x512xf32>
    %113 = vector.extract_strided_slice %1 {offsets = [8, 0], sizes = [1, 512], strides = [1, 1]} : vector<9x512xf32> to vector<1x512xf32>
    %114 = vector.broadcast %113 : vector<1x512xf32> to vector<8x512xf32>
    %115 = arith.mulf %112, %114 : vector<8x512xf32>
    %116 = tpu.concatenate %87, %91, %95, %99, %83, %103, %107, %111, %115 in 0 : vector<8x512xf32>, vector<8x512xf32>, vector<8x512xf32>, vector<8x512xf32>, vector<8x512xf32>, vector<8x512xf32>, vector<8x512xf32>, vector<8x512xf32>, vector<8x512xf32> -> vector<72x512xf32>
    %117 = arith.truncf %116 : vector<72x512xf32> to vector<72x512xbf16>
    %c0_30 = arith.constant 0 : index
    %c0_31 = arith.constant 0 : index
    %118 = vector.load %arg7[%c0_30, %c0_31] : memref<8x72xbf16, #tpu.memory_space<vmem>>, vector<8x72xbf16>
    %cst_32 = arith.constant dense<0.000000e+00> : vector<8x512xf32>
    %119 = tpu.matmul %118, %117, %cst_32 {dimension_numbers = #tpu.dot_dimension_numbers<[1], [0], [0], [1], [0, 0, 1, 1], [], []>} : vector<8x72xbf16>, vector<72x512xbf16>, vector<8x512xf32> -> vector<8x512xf32>
    %c0_33 = arith.constant 0 : index
    %c0_34 = arith.constant 0 : index
    %120 = vector.load %arg8[%c0_33, %c0_34] : memref<8x1xf32, #tpu.memory_space<vmem>>, vector<8x1xf32>
    %121 = vector.broadcast %120 : vector<8x1xf32> to vector<8x512xf32>
    %122 = arith.addf %119, %121 : vector<8x512xf32>
    %cst_35 = arith.constant 0.000000e+00 : f32
    %123 = vector.broadcast %cst_35 : f32 to vector<8x512xf32>
    %124 = arith.maximumf %122, %123 : vector<8x512xf32>
    %c511_i32_36 = arith.constant 511 : i32
    %125 = tpu.dynamic_rotate %124 by %c511_i32_36 dim 1 : vector<8x512xf32>, i32 -> vector<8x512xf32>
    %126 = arith.maximumf %124, %125 : vector<8x512xf32>
    %c496_i32_37 = arith.constant 496 : i32
    %127 = tpu.dynamic_rotate %124 by %c496_i32_37 dim 1 : vector<8x512xf32>, i32 -> vector<8x512xf32>
    %128 = arith.maximumf %126, %127 : vector<8x512xf32>
    %c495_i32_38 = arith.constant 495 : i32
    %129 = tpu.dynamic_rotate %124 by %c495_i32_38 dim 1 : vector<8x512xf32>, i32 -> vector<8x512xf32>
    %130 = arith.maximumf %128, %129 : vector<8x512xf32>
    %131 = arith.truncf %130 : vector<8x512xf32> to vector<8x512xbf16>
    %c0_39 = arith.constant 0 : index
    %c0_40 = arith.constant 0 : index
    %132 = vector.load %arg10[%c0_39, %c0_40] : memref<512x128xbf16, #tpu.memory_space<vmem>>, vector<512x128xbf16>
    %cst_41 = arith.constant dense<0.000000e+00> : vector<8x128xf32>
    %133 = tpu.matmul %131, %132, %cst_41 {dimension_numbers = #tpu.dot_dimension_numbers<[1], [0], [0], [1], [0, 0, 1, 1], [], []>} : vector<8x512xbf16>, vector<512x128xbf16>, vector<8x128xf32> -> vector<8x128xf32>
    %c0_42 = arith.constant 0 : index
    %c0_43 = arith.constant 0 : index
    %134 = vector.load %arg9[%c0_42, %c0_43] : memref<8x1xf32, #tpu.memory_space<vmem>>, vector<8x1xf32>
    %135 = vector.broadcast %134 : vector<8x1xf32> to vector<8x128xf32>
    %136 = arith.addf %133, %135 : vector<8x128xf32>
    %137 = arith.truncf %0 : vector<8x512xf32> to vector<8x512xbf16>
    %c0_44 = arith.constant 0 : index
    %c0_45 = arith.constant 0 : index
    %138 = vector.load %arg11[%c0_44, %c0_45] : memref<512x128xbf16, #tpu.memory_space<vmem>>, vector<512x128xbf16>
    %cst_46 = arith.constant dense<0.000000e+00> : vector<8x128xf32>
    %139 = tpu.matmul %137, %138, %cst_46 {dimension_numbers = #tpu.dot_dimension_numbers<[1], [0], [0], [1], [0, 0, 1, 1], [], []>} : vector<8x512xbf16>, vector<512x128xbf16>, vector<8x128xf32> -> vector<8x128xf32>
    %c0_47 = arith.constant 0 : index
    %c0_48 = arith.constant 0 : index
    %140 = vector.load %arg12[%c0_47, %c0_48] : memref<8x8xbf16, #tpu.memory_space<vmem>>, vector<8x8xbf16>
    %141 = arith.truncf %139 : vector<8x128xf32> to vector<8x128xbf16>
    %cst_49 = arith.constant dense<0.000000e+00> : vector<8x128xf32>
    %142 = tpu.matmul %140, %141, %cst_49 {dimension_numbers = #tpu.dot_dimension_numbers<[1], [0], [0], [1], [0, 0, 1, 1], [], []>} : vector<8x8xbf16>, vector<8x128xbf16>, vector<8x128xf32> -> vector<8x128xf32>
    %143 = arith.addf %136, %142 : vector<8x128xf32>
    %c0_50 = arith.constant 0 : index
    %c0_51 = arith.constant 0 : index
    %144 = vector.load %arg13[%c0_50, %c0_51] : memref<8x1xf32, #tpu.memory_space<vmem>>, vector<8x1xf32>
    %145 = vector.broadcast %144 : vector<8x1xf32> to vector<8x128xf32>
    %146 = arith.addf %143, %145 : vector<8x128xf32>
    %c0_52 = arith.constant 0 : index
    %c0_53 = arith.constant 0 : index
    %147 = vector.load %arg14[%c0_52, %c0_53] : memref<8x128xf32, #tpu.memory_space<vmem>>, vector<8x128xf32>
    tpu.vector_store %arg14[%c0_52, %c0_53], %146 {strides = array<i32>} : memref<8x128xf32, #tpu.memory_space<vmem>>, vector<8x128xf32>,
    return
  }
  func.func @transform_0(%arg0: i32) -> (i32, i32) {
    %c0_i32 = arith.constant 0 : i32
    %c0_i32_0 = arith.constant 0 : i32
    return %arg0, %c0_i32 : i32, i32
  }
  func.func @transform_1(%arg0: i32) -> (i32, i32) {
    %c0_i32 = arith.constant 0 : i32
    %c0_i32_0 = arith.constant 0 : i32
    %c0_i32_1 = arith.constant 0 : i32
    return %c0_i32, %c0_i32_0 : i32, i32
  }
  func.func @transform_2(%arg0: i32) -> (i32, i32) {
    %c0_i32 = arith.constant 0 : i32
    %c0_i32_0 = arith.constant 0 : i32
    %c0_i32_1 = arith.constant 0 : i32
    return %c0_i32, %c0_i32_0 : i32, i32
  }
  func.func @transform_3(%arg0: i32) -> (i32, i32) {
    %c0_i32 = arith.constant 0 : i32
    %c0_i32_0 = arith.constant 0 : i32
    %c0_i32_1 = arith.constant 0 : i32
    return %c0_i32, %c0_i32_0 : i32, i32
  }
  func.func @transform_4(%arg0: i32) -> (i32, i32) {
    %c0_i32 = arith.constant 0 : i32
    %c0_i32_0 = arith.constant 0 : i32
    %c0_i32_1 = arith.constant 0 : i32
    return %c0_i32, %c0_i32_0 : i32, i32
  }
  func.func @transform_5(%arg0: i32) -> (i32, i32) {
    %c0_i32 = arith.constant 0 : i32
    %c0_i32_0 = arith.constant 0 : i32
    %c0_i32_1 = arith.constant 0 : i32
    return %c0_i32, %c0_i32_0 : i32, i32
  }
  func.func @transform_6(%arg0: i32) -> (i32, i32) {
    %c0_i32 = arith.constant 0 : i32
    %c0_i32_0 = arith.constant 0 : i32
    %c0_i32_1 = arith.constant 0 : i32
    return %c0_i32, %c0_i32_0 : i32, i32
  }
  func.func @transform_7(%arg0: i32) -> (i32, i32) {
    %c0_i32 = arith.constant 0 : i32
    %c0_i32_0 = arith.constant 0 : i32
    %c0_i32_1 = arith.constant 0 : i32
    return %c0_i32, %c0_i32_0 : i32, i32
  }
  func.func @transform_8(%arg0: i32) -> (i32, i32) {
    %c0_i32 = arith.constant 0 : i32
    %c0_i32_0 = arith.constant 0 : i32
    %c0_i32_1 = arith.constant 0 : i32
    return %c0_i32, %c0_i32_0 : i32, i32
  }
  func.func @transform_9(%arg0: i32) -> (i32, i32) {
    %c0_i32 = arith.constant 0 : i32
    %c0_i32_0 = arith.constant 0 : i32
    %c0_i32_1 = arith.constant 0 : i32
    return %c0_i32, %c0_i32_0 : i32, i32
  }
  func.func @transform_10(%arg0: i32) -> (i32, i32) {
    %c0_i32 = arith.constant 0 : i32
    %c0_i32_0 = arith.constant 0 : i32
    %c0_i32_1 = arith.constant 0 : i32
    return %c0_i32, %c0_i32_0 : i32, i32
  }
  func.func @transform_11(%arg0: i32) -> (i32, i32) {
    %c0_i32 = arith.constant 0 : i32
    %c0_i32_0 = arith.constant 0 : i32
    %c0_i32_1 = arith.constant 0 : i32
    return %c0_i32, %c0_i32_0 : i32, i32
  }
  func.func @transform_12(%arg0: i32) -> (i32, i32) {
    %c0_i32 = arith.constant 0 : i32
    %c0_i32_0 = arith.constant 0 : i32
    %c0_i32_1 = arith.constant 0 : i32
    return %c0_i32, %c0_i32_0 : i32, i32
  }
  func.func @transform_13(%arg0: i32) -> (i32, i32) {
    %c0_i32 = arith.constant 0 : i32
    %c0_i32_0 = arith.constant 0 : i32
    return %arg0, %c0_i32 : i32, i32
  }
}

</mosaic_0001>

<bundles_post_ra>
// kernel: tpu_custom_call.1
= control target key start
LH: loop header
LB: loop body
LE: loop exit
PB: predicated region body
PF: predicated region fallthrough
CT: control target
= control target key end

     0   :  { %18 = vsyncpa [#allocation3], 0  ;;  %s3004_s0 = inlined_call_operand.hbm [shape: f32[8,512], index: 0, kind: input, shape index: {}]   ;;  %s3005_s1 = inlined_call_operand.hbm [shape: f32[9,512], index: 1, kind: input, shape index: {}]   ;;  %s3006_s2 = inlined_call_operand.vmem [shape: bf16[8,72], index: 2, kind: input, shape index: {}]   ;;  %s3007_s3 = inlined_call_operand.vmem [shape: f32[8,1], index: 3, kind: input, shape index: {}]   ;;  %s3008_s4 = inlined_call_operand.vmem [shape: bf16[8,72], index: 4, kind: input, shape index: {}]   ;;  %s3009_s5 = inlined_call_operand.vmem [shape: f32[8,1], index: 5, kind: input, shape index: {}]   ;;  %s3010_s6 = inlined_call_operand.vmem [shape: bf16[8,72], index: 6, kind: input, shape index: {}]   ;;  %s3011_s7 = inlined_call_operand.vmem [shape: f32[8,1], index: 7, kind: input, shape index: {}]   ;;  %s3012_s8 = inlined_call_operand.vmem [shape: f32[8,1], index: 8, kind: input, shape index: {}]   ;;  %s3013_s9 = inlined_call_operand.hbm [shape: bf16[512,128], index: 9, kind: input, shape index: {}]   ;;  %s3014_s10 = inlined_call_operand.hbm [shape: bf16[512,128], index: 10, kind: input, shape index: {}]   ;;  %s3015_s11 = inlined_call_operand.vmem [shape: bf16[8,8], index: 11, kind: input, shape index: {}]   ;;  %s3016_s12 = inlined_call_operand.vmem [shape: f32[8,1], index: 12, kind: input, shape index: {}]   ;;  %s3017_s13 = inlined_call_operand.hbm [shape: f32[8,128], index: 13, kind: output, shape index: {}]  }
   0x1   :  { %19 = vsyncpa [#allocation6], 0 }
   0x2   :  { %20 = vsyncpa [#allocation9], 0  ;;  %s37_s27 = sshll.u32 %s3005_s1, 4  ;;  %s38_s27 = int_to_ptr.hbm [resolvable:$true] %s37_s27 }
   0x3   :  { %21 = vsyncpa [#allocation4], 0  ;;  %s2089_s28 = smov [#allocation5]   ;;  %s27_s15 = sshll.u32 %s3004_s0, 4  ;;  %s28_s15 = int_to_ptr.hbm [resolvable:$true] %s27_s15 }
   0x4   :  { %s39_s29 = sshll.u32 %s2089_s28, 4  ;;  %s2090_s16 = smov 512   ;;  %s40_s29 = int_to_ptr.vmem [resolvable:$true] %s39_s29 }
   0x5   :  { %s2091_s17 = smov 32   ;;  %s2092_s18 = smov [#allocation2]  }
   0x6   :  { %45 = dma.hbm_to_vmem [thread:$0]  %s38_s27, 1024, %s40_s29, [#allocation6], %s2090_s16, %s2090_s16, %s2091_s17  }
   0x7   :  { %s29_s19 = sshll.u32 %s2092_s18, 4  ;;  %s64_s22 = sshll.u32 %s3013_s9, 4  ;;  %s30_s19 = int_to_ptr.vmem [resolvable:$true] %s29_s19  ;;  %s65_s22 = int_to_ptr.hbm [resolvable:$true] %s64_s22 }
   0x8   :  { %32 = dma.hbm_to_vmem [thread:$0]  %s28_s15, 512, %s30_s19, [#allocation3]  }
   0x9   :  { %s2093_s1 = smov [#allocation7]   ;;  %s77_s0 = sshll.u32 %s3014_s10, 4  ;;  %s78_s0 = int_to_ptr.hbm [resolvable:$true] %s77_s0 }
   0xa   :  { %s66_s23 = sshll.u32 %s2093_s1, 4  ;;  %s2094_s26 = smov 64   ;;  %s67_s23 = int_to_ptr.vmem [resolvable:$true] %s66_s23 }
   0xb   :  { %s2095_s28 = smov 4   ;;  %s2096_s27 = smov [#allocation8]  }
   0xc   :  { %72 = dma.hbm_to_vmem [thread:$0]  %s65_s22, 4096, %s67_s23, [#allocation6], %s2094_s26, %s2094_s26, %s2095_s28  }
   0xd   :  { %s79_s29 = sshll.u32 %s2096_s27, 4  ;;  %s80_s29 = int_to_ptr.vmem [resolvable:$true] %s79_s29 }
   0xe   :  { %85 = dma.hbm_to_vmem [thread:$0]  %s78_s0, 4096, %s80_s29, [#allocation9], %s2094_s26, %s2094_s26, %s2095_s28  }
   0xf   :  { %2081 = dma.done.wait [#allocation3], 512  }
  0x10   :  { %2082 = vsyncadd [#allocation3], 4294966784 }
  0x11   :  { %2083 = dma.done.wait [#allocation6], 5120  }
  0x12   :  { %2084 = vsyncadd [#allocation6], 4294962176 }
  0x13   :  { %2085 = dma.done.wait [#allocation9], 4096  }
  0x14   :  { %2086 = vsyncadd [#allocation9], 4294963200  ;;  %v2189_v0 = vld [vmem:[#allocation2 + $0x18] sm:$0xff]  ;;  %v2191_v1 = vld [vmem:[#allocation2 + $0x10] sm:$0xff]  ;;  %s2097_s9 = smov 111   ;;  %s2098_s10 = smov 113   ;;  %v127_v6 = vlaneseq }
  0x15   :  { %v2193_v2 = vld [vmem:[#allocation2] sm:$0xff]  ;;  %274 = vrot.lane.b32.xlu1 %v2189_v0, %s2097_s9  ;;  %230 = vrot.lane.b32.xlu2 %v2191_v1, %s2098_s10  ;;  %s2099_s30 = smov 112   ;;  %v2213_v3 = vld [vmem:[#allocation2 + $0x8] sm:$0xff]  ;;  %s2100_s14 = smov 127   ;;  %v2266_v9 = vld [vmem:[#allocation5 + $0x38] ss:$0 sm:$0xff] }
  0x16   :  { %268 = vrot.lane.b32.xlu0 %v2193_v2, %s2097_s9  ;;  %s2101_s15 = smov 15   ;;  %s2102_s16 = smov 1   ;;  %v2263_v7 = vand.u32 127, %v127_v6  ;;  %vm320_vm1 = vcmask 1043456   ;;  %v2272_v16 = vld [vmem:[#allocation5 + $0x30] ss:$0 sm:$0xff] }
  0x17   :  { %s2103_s17 = smov 17   ;;  %s2104_s18 = smov 16   ;;  %v2278_v21 = vld [vmem:[#allocation5 + $0x10] sm:$0xff]  ;;  %v2282_v23 = vld [vmem:[#allocation5 + $0x18] sm:$0xff]  ;;  %v2311_v43 = vld [vmem:[#allocation5 + $0x20] ss:$0 sm:$0xff] }
  0x18   :  { %vm276_vm0 = vcmp.lt.s32.totalorder %v2263_v7, 111  ;;  %vm234_vm2 = vcmp.lt.s32.totalorder %v2263_v7, 113  ;;  %v2285_v25 = vperm.slane %v2278_v21, 6  ;;  %vm255_vm3 = vcmp.lt.s32.totalorder %v2263_v7, 112  ;;  %v2313_v44 = vld [vmem:[#allocation5 + $0x28] ss:$0 sm:$0xff] }
  0x19   :  { %v2289_v26 = vperm.slane %v2278_v21, 7  ;;  %v2295_v28 = vperm.slane %v2282_v23, 6  ;;  %v2299_v30 = vperm.slane %v2282_v23, 7  ;;  %v2317_v46 = vld [vmem:[#allocation5 + $0x8] sm:$0xff]  ;;  %v2319_v48 = vld [vmem:[#allocation5] sm:$0xff]  ;;  %vm213_vm4 = vcmp.lt.s32.totalorder %v2263_v7, 127 }
  0x1a   :  { %v2330_v54 = vperm.slane %v2317_v46, 7  ;;  %v2333_v55 = vperm.slane %v2319_v48, 7  ;;  %v2336_v58 = vperm.slane %v2319_v48, 6  ;;  %v2343_v61 = vperm.slane %v2317_v46, 6  ;;  %s2106_s28 = smov [#allocation10]  }
  0x1b   :  { %v2352_v6 = vperm.slane %v2282_v23, 5  ;;  %vm171_vm5 = vcmp.lt.s32.totalorder %v2263_v7, 15  ;;  %vm192_vm6 = vcmp.lt.s32.totalorder %v2263_v7, 1  ;;  %vm129_vm7 = vcmp.lt.s32.totalorder %v2263_v7, 17  ;;  %s1555_s27 = sshll.u32 %s2106_s28, 4  ;;  %s1556_s27 = int_to_ptr.vmem [resolvable:$true] %s1555_s27 }
  0x1c   :  { %vm150_vm8 = vcmp.lt.s32.totalorder %v2263_v7, 16  ;;  %vm316_vm9 = vcmask 588800   ;;  %v1960_v7 = vld [vmem:[#allocation2 + $0x10] sm:$0xff]  ;;  %vm1521_vm10 = vcmask 64512  }
  0x1d   :  { %232 = vrot.lane.b32.xlu2 %v2189_v0, %s2098_s10  ;;  %226 = vrot.lane.b32.xlu1 %v2193_v2, %s2098_s10 }
  0x1e   :  { %272 = vrot.lane.b32.xlu0 %v2191_v1, %s2097_s9 }
  0x25   :  { %253 = vrot.lane.b32.xlu2 %v2189_v0, %s2099_s30  ;;  %251 = vrot.lane.b32.xlu1 %v2191_v1, %s2099_s30 }
  0x26   :  { %247 = vrot.lane.b32.xlu0 %v2193_v2, %s2099_s30 }
  0x2d   :  { %209 = vrot.lane.b32.xlu2 %v2191_v1, %s2100_s14  ;;  %205 = vrot.lane.b32.xlu1 %v2193_v2, %s2100_s14 }
  0x2e   :  { %270 = vrot.lane.b32.xlu0 %v2213_v3, %s2097_s9 }
  0x35   :  { %249 = vrot.lane.b32.xlu2 %v2213_v3, %s2099_s30  ;;  %228 = vrot.lane.b32.xlu1 %v2213_v3, %s2098_s10 }
  0x36   :  { %211 = vrot.lane.b32.xlu0 %v2189_v0, %s2100_s14 }
  0x3d   :  { %169 = vrot.lane.b32.xlu2 %v2189_v0, %s2101_s15  ;;  %167 = vrot.lane.b32.xlu1 %v2191_v1, %s2101_s15 }
  0x3e   :  { %165 = vrot.lane.b32.xlu0 %v2213_v3, %s2101_s15 }
  0x45   :  { %190 = vrot.lane.b32.xlu2 %v2189_v0, %s2102_s16  ;;  %188 = vrot.lane.b32.xlu1 %v2191_v1, %s2102_s16 }
  0x46   :  { %186 = vrot.lane.b32.xlu0 %v2213_v3, %s2102_s16 }
  0x4d   :  { %123 = vrot.lane.b32.xlu2 %v2191_v1, %s2103_s17  ;;  %121 = vrot.lane.b32.xlu1 %v2213_v3, %s2103_s17 }
  0x4e   :  { %207 = vrot.lane.b32.xlu0 %v2213_v3, %s2100_s14 }
  0x55   :  { %146 = vrot.lane.b32.xlu2 %v2191_v1, %s2104_s18  ;;  %144 = vrot.lane.b32.xlu1 %v2213_v3, %s2104_s18 }
  0x56   :  { %125 = vrot.lane.b32.xlu0 %v2189_v0, %s2103_s17 }
  0x5d   :  { %184 = vrot.lane.b32.xlu2 %v2193_v2, %s2102_s16  ;;  %163 = vrot.lane.b32.xlu1 %v2193_v2, %s2101_s15 }
  0x5e   :  { %148 = vrot.lane.b32.xlu0 %v2189_v0, %s2104_s18 }
  0x65   :  { %142 = vrot.lane.b32.xlu1 %v2193_v2, %s2104_s18 }
  0x66   :  { %119 = vrot.lane.b32.xlu0 %v2193_v2, %s2103_s17 }
  0x6f   :  { %v2261_v4 = vpop.permute.xlu2 %230 }
  0x77   :  { %v233_v5 = vpop.permute.xlu2 %232 }
  0x78   :  { %v235_v27 = vsel %vm234_vm2, %v2261_v4, %v233_v5 }
  0x79   :  { %v245_v35 = vmul.f32 %v2285_v25, %v235_v27 }
  0x7f   :  { %v254_v8 = vpop.permute.xlu2 %253 }
  0x87   :  { %v275_v10 = vpop.permute.xlu1 %274  ;;  %v2274_v17 = vpop.permute.xlu2 %209 }
  0x88   :  { %v269_v11 = vpop.permute.xlu0 %268 }
  0x89   :  { %v280_v12 = vsel %vm276_vm0, %v275_v10, %v269_v11 }
  0x8a   :  { %v288_v13 = vmul.f32 %v2266_v9, %v280_v12 }
  0x8c   :  { %v308_v14 = vpack.c.bf16 %v288_v13, %v288_v13 }
  0x8e   :  { %v331_v15 = vsel %vm320_vm1, %v308_v14, 0 }
  0x8f   :  { %375 = vmatpush.bf16.msra.mxu3 %v331_v15  ;;  %v227_v18 = vpop.permute.xlu1 %226  ;;  %v250_v36 = vpop.permute.xlu2 %249 }
  0x90   :  { %v273_v19 = vpop.permute.xlu0 %272  ;;  %v238_v31 = vsel %vm234_vm2, %v233_v5, %v227_v18  ;;  %v2349_v5 = vperm.slane %v2278_v21, 5 }
  0x91   :  { %v277_v20 = vsel %vm276_vm0, %v273_v19, %v275_v10  ;;  %v246_v39 = vmul.f32 %v2295_v28, %v238_v31 }
  0x92   :  { %v287_v22 = vmul.f32 %v2272_v16, %v277_v20 }
  0x94   :  { %v307_v24 = vpack.c.bf16 %v287_v22, %v287_v22 }
  0x96   :  { %v328_v29 = vsel %vm320_vm1, %v307_v24, 0 }
  0x97   :  { %362 = vmatpush.bf16.msra.mxu2 %v328_v29  ;;  %v252_v32 = vpop.permute.xlu1 %251  ;;  %v2327_v53 = vpop.permute.xlu2 %169 }
  0x98   :  { %v256_v33 = vsel %vm255_vm3, %v252_v32, %v254_v8  ;;  %v248_v34 = vpop.permute.xlu0 %247  ;;  %v257_v59 = vsel %vm255_vm3, %v250_v36, %v252_v32 }
  0x99   :  { %v266_v37 = vmul.f32 %v2289_v26, %v256_v33  ;;  %v259_v38 = vsel %vm255_vm3, %v254_v8, %v248_v34  ;;  %v258_v60 = vsel %vm255_vm3, %v248_v34, %v250_v36  ;;  %v265_v10 = vmul.f32 %v2330_v54, %v257_v59 }
  0x9a   :  { %v267_v40 = vmul.f32 %v2299_v30, %v259_v38  ;;  %v2381_v36 = vperm.slane %v2282_v23, 3  ;;  %v2404_v59 = vperm.slane %v2319_v48, 5 }
  0x9b   :  { %v303_v41 = vpack.c.bf16 %v266_v37, %v245_v35  ;;  %v2377_v35 = vperm.slane %v2282_v23, 2  ;;  %v2390_v37 = vperm.slane %v2278_v21, 3 }
  0x9c   :  { %v304_v42 = vpack.c.bf16 %v267_v40, %v246_v39 }
  0x9d   :  { %363 = vmatpush.bf16.msra.mxu2 %v303_v41 }
  0x9e   :  { %376 = vmatpush.bf16.msra.mxu3 %v304_v42 }
  0x9f   :  { %v2315_v45 = vpop.permute.xlu1 %205  ;;  %v191_v32 = vpop.permute.xlu2 %190 }
  0xa0   :  { %v271_v47 = vpop.permute.xlu0 %270 }
  0xa1   :  { %v278_v49 = vsel %vm276_vm0, %v271_v47, %v273_v19  ;;  %v279_v50 = vsel %vm276_vm0, %v269_v11, %v271_v47  ;;  %v264_v11 = vmul.f32 %v2333_v55, %v258_v60  ;;  %v2407_v60 = vperm.slane %v2317_v46, 5 }
  0xa2   :  { %v285_v51 = vmul.f32 %v2311_v43, %v279_v50  ;;  %v286_v52 = vmul.f32 %v2313_v44, %v278_v49 }
  0xa4   :  { %v305_v56 = vpack.c.bf16 %v285_v51, %v285_v51  ;;  %v306_v57 = vpack.c.bf16 %v286_v52, %v286_v52 }
  0xa6   :  { %v322_v62 = vsel %vm320_vm1, %v305_v56, 0  ;;  %v325_v63 = vsel %vm320_vm1, %v306_v57, 0 }
  0xa7   :  { %336 = vmatpush.bf16.msra.mxu0 %v322_v62  ;;  %349 = vmatpush.bf16.msra.mxu1 %v325_v63  ;;  %v229_v8 = vpop.permute.xlu1 %228  ;;  %v124_v38 = vpop.permute.xlu2 %123 }
  0xa8   :  { %v236_v12 = vsel %vm234_vm2, %v229_v8, %v2261_v4  ;;  %v237_v13 = vsel %vm234_vm2, %v227_v18, %v229_v8  ;;  %v212_v14 = vpop.permute.xlu0 %211 }
  0xa9   :  { %v243_v15 = vmul.f32 %v2336_v58, %v237_v13  ;;  %v244_v19 = vmul.f32 %v2343_v61, %v236_v12  ;;  %v214_v20 = vsel %vm213_vm4, %v2274_v17, %v212_v14  ;;  %v217_v22 = vsel %vm213_vm4, %v212_v14, %v2315_v45  ;;  %v310_v12 = vld [vmem:[%s3007_s3] sm:$0xff] }
  0xaa   :  { %v224_v24 = vmul.f32 %v2349_v5, %v214_v20  ;;  %v225_v4 = vmul.f32 %v2352_v6, %v217_v22  ;;  %v2430_v20 = vperm.slane %v2278_v21, 1 }
  0xab   :  { %v301_v27 = vpack.c.bf16 %v264_v11, %v243_v15  ;;  %v302_v29 = vpack.c.bf16 %v265_v10, %v244_v19  ;;  %v2105_v15 = vmov 0  }
  0xac   :  { %v299_v18 = vpack.c.bf16 %v224_v24, %v2191_v1  ;;  %v300_v31 = vpack.c.bf16 %v225_v4, %v2189_v0  ;;  %v2387_v1 = vperm.slane %v2278_v21, 2  ;;  %1920 = vset.pattern.permute.xlu2 %v2105_v15  ;;  %1951 = vset.pattern.permute.xlu0 %v2105_v15 }
  0xad   :  { %337 = vmatpush.bf16.msra.mxu0 %v301_v27  ;;  %350 = vmatpush.bf16.msra.mxu1 %v302_v29 }
  0xae   :  { %364 = vmatpush.bf16.msra.mxu2 %v299_v18  ;;  %377 = vmatpush.bf16.msra.mxu3 %v300_v31  ;;  %v2443_v31 = vperm.slane %v2317_v46, 3 }
  0xaf   :  { %v168_v33 = vpop.permute.xlu1 %167  ;;  %v147_v8 = vpop.permute.xlu2 %146  ;;  %313 = vperm.xlu2 %1920, %v310_v12   ;;  %1952 = vset.pattern.permute.xlu1 %v2105_v15  ;;  %v2488_v15 = vperm.slane %v2319_v48, 0 }
  0xb0   :  { %v2373_v34 = vpop.permute.xlu0 %165  ;;  %v172_v0 = vsel %vm171_vm5, %v168_v33, %v2327_v53 }
  0xb1   :  { %v173_v39 = vsel %vm171_vm5, %v2373_v34, %v168_v33  ;;  %v183_v47 = vmul.f32 %v2377_v35, %v172_v0  ;;  %v2448_v0 = vperm.slane %v2319_v48, 2 }
  0xb2   :  { %v182_v51 = vmul.f32 %v2387_v1, %v173_v39  ;;  %v2451_v39 = vperm.slane %v2317_v46, 2 }
  0xb7   :  { %v189_v40 = vpop.permute.xlu1 %188  ;;  %v185_v29 = vpop.permute.xlu2 %184 }
  0xb8   :  { %v193_v41 = vsel %vm192_vm6, %v189_v40, %v191_v32  ;;  %v187_v42 = vpop.permute.xlu0 %186  ;;  %v196_v33 = vsel %vm192_vm6, %v191_v32, %v185_v29  ;;  %v2462_v32 = vperm.slane %v2282_v23, 1 }
  0xb9   :  { %v204_v49 = vmul.f32 %v2381_v36, %v193_v41  ;;  %v194_v50 = vsel %vm192_vm6, %v187_v42, %v189_v40  ;;  %v309_v40 = vld [vmem:[%s3006_s2] sm:$0xf]  ;;  %v195_v41 = vsel %vm192_vm6, %v185_v29, %v187_v42 }
  0xba   :  { %v203_v52 = vmul.f32 %v2390_v37, %v194_v50 }
  0xbb   :  { %v296_v56 = vpack.c.bf16 %v204_v49, %v183_v47  ;;  %v2459_v47 = vperm.slane %v2282_v23, 0  ;;  %v202_v23 = vmul.f32 %v2443_v31, %v195_v41 }
  0xbc   :  { %v295_v57 = vpack.c.bf16 %v203_v52, %v182_v51 }
  0xbd   :  { %378 = vmatpush.bf16.msra.mxu3 %v296_v56 }
  0xbe   :  { %365 = vmatpush.bf16.msra.mxu2 %v295_v57 }
  0xbf   :  { %v2409_v62 = vpop.permute.xlu1 %121 }
  0xc0   :  { %v208_v63 = vpop.permute.xlu0 %207  ;;  %v131_v22 = vsel %vm129_vm7, %v2409_v62, %v124_v38 }
  0xc1   :  { %v215_v10 = vsel %vm213_vm4, %v208_v63, %v2274_v17  ;;  %v216_v11 = vsel %vm213_vm4, %v2315_v45, %v208_v63  ;;  %v2426_v45 = vperm.slane %v2278_v21, 0  ;;  %v2440_v21 = vperm.slane %v2319_v48, 3 }
  0xc2   :  { %v222_v13 = vmul.f32 %v2404_v59, %v216_v11  ;;  %v223_v14 = vmul.f32 %v2407_v60, %v215_v10 }
  0xc3   :  { %v201_v51 = vmul.f32 %v2440_v21, %v196_v33 }
  0xc4   :  { %v297_v17 = vpack.c.bf16 %v222_v13, %v2193_v2  ;;  %v298_v19 = vpack.c.bf16 %v223_v14, %v2213_v3  ;;  %v140_v3 = vmul.f32 %v2426_v45, %v131_v22  ;;  %v2485_v14 = vperm.slane %v2317_v46, 1 }
  0xc6   :  { %338 = vmatpush.bf16.msra.mxu0 %v297_v17  ;;  %351 = vmatpush.bf16.msra.mxu1 %v298_v19 }
  0xc7   :  { %v145_v24 = vpop.permute.xlu1 %144 }
  0xc8   :  { %v152_v2 = vsel %vm150_vm8, %v145_v24, %v147_v8  ;;  %v126_v4 = vpop.permute.xlu0 %125 }
  0xc9   :  { %v161_v27 = vmul.f32 %v2430_v20, %v152_v2  ;;  %v130_v49 = vsel %vm129_vm7, %v124_v38, %v126_v4 }
  0xca   :  { %v141_v10 = vmul.f32 %v2459_v47, %v130_v49 }
  0xcb   :  { %v291_v18 = vpack.c.bf16 %v161_v27, %v140_v3 }
  0xcd   :  { %366 = vmatpush.bf16.msra.mxu2 %v291_v18 }
  0xcf   :  { %v164_v50 = vpop.permute.xlu1 %163 }
  0xd0   :  { %v174_v52 = vsel %vm171_vm5, %v164_v50, %v2373_v34  ;;  %v175_v42 = vsel %vm171_vm5, %v2327_v53, %v164_v50  ;;  %v149_v56 = vpop.permute.xlu0 %148  ;;  %1571 = vmatmul.msk.bf16.vlgmr.msra.gmra.mxu2 %vm316_vm9, %v309_v40  ;;  %v2482_v53 = vperm.slane %v2319_v48, 1 }
  0xd1   :  { %v180_v57 = vmul.f32 %v2448_v0, %v175_v42  ;;  %v181_v38 = vmul.f32 %v2451_v39, %v174_v52  ;;  %v151_v63 = vsel %vm150_vm8, %v147_v8, %v149_v56  ;;  %v2491_v8 = vperm.slane %v2317_v46, 0 }
  0xd2   :  { %v162_v34 = vmul.f32 %v2462_v32, %v151_v63 }
  0xd3   :  { %v293_v11 = vpack.c.bf16 %v201_v51, %v180_v57  ;;  %v294_v12 = vpack.c.bf16 %v202_v23, %v181_v38 }
  0xd4   :  { %v292_v13 = vpack.c.bf16 %v162_v34, %v141_v10 }
  0xd5   :  { %339 = vmatpush.bf16.msra.mxu0 %v293_v11  ;;  %352 = vmatpush.bf16.msra.mxu1 %v294_v12  ;;  %v538_v12 = vld [vmem:[%s3009_s5] sm:$0xff] }
  0xd6   :  { %379 = vmatpush.bf16.msra.mxu3 %v292_v13 }
  0xd7   :  { %v143_v17 = vpop.permute.xlu1 %142 }
  0xd8   :  { %v153_v19 = vsel %vm150_vm8, %v143_v17, %v145_v24  ;;  %v154_v22 = vsel %vm150_vm8, %v149_v56, %v143_v17  ;;  %v120_v2 = vpop.permute.xlu0 %119 }
  0xd9   :  { %v159_v3 = vmul.f32 %v2482_v53, %v154_v22  ;;  %v160_v27 = vmul.f32 %v2485_v14, %v153_v19  ;;  %v132_v48 = vsel %vm129_vm7, %v120_v2, %v2409_v62  ;;  %v133_v46 = vsel %vm129_vm7, %v126_v4, %v120_v2  ;;  %1572 = vmatmul.msk.bf16.vlgmr.msra.gmra.mxu3 %vm316_vm9, %v309_v40 }
  0xda   :  { %v138_v29 = vmul.f32 %v2488_v15, %v133_v46  ;;  %v139_v24 = vmul.f32 %v2491_v8, %v132_v48 }
  0xdc   :  { %v289_v18 = vpack.c.bf16 %v159_v3, %v138_v29  ;;  %v290_v33 = vpack.c.bf16 %v160_v27, %v139_v24 }
  0xde   :  { %340 = vmatpush.bf16.msra.mxu0 %v289_v18  ;;  %353 = vmatpush.bf16.msra.mxu1 %v290_v33 }
  0xe1   :  { %1569 = vmatmul.msk.bf16.vlgmr.msra.gmra.mxu0 %vm316_vm9, %v309_v40  ;;  %1570 = vmatmul.msk.bf16.vlgmr.msra.gmra.mxu1 %vm316_vm9, %v309_v40 }
 0x109   :  { %v314_v62 = vpop.permute.xlu2 %313 }
 0x153   :  { %v368_v41 = vpop.f32.mrf.mxu2 }
 0x154   :  { %v369_v34 = vadd.f32 %v368_v41, %v314_v62 }
 0x156   :  { %v2539_v11 = vmax.f32 %v369_v34, 0.0 }
 0x15b   :  { %v370_v49 = vpop.f32.mrf.mxu2 }
 0x15c   :  { %v381_v50 = vpop.f32.mrf.mxu3 }
 0x15d   :  { %v382_v57 = vadd.f32 %v381_v50, %v314_v62 }
 0x15e   :  { %v342_v51 = vpop.f32.mrf.mxu0  ;;  %v355_v4 = vpop.f32.mrf.mxu1 }
 0x15f   :  { %v343_v52 = vadd.f32 %v342_v51, %v314_v62  ;;  %v356_v42 = vadd.f32 %v355_v4, %v314_v62  ;;  %v2519_v10 = vmax.f32 %v382_v57, 0.0 }
 0x161   :  { %v2509_v56 = vmax.f32 %v343_v52, 0.0  ;;  %v2511_v23 = vmax.f32 %v356_v42, 0.0 }
 0x163   :  { %453 = vrot.lane.b32.xlu1 %v2509_v56, %s2100_s14  ;;  %501 = vrot.lane.b32.xlu0 %v2509_v56, %s2097_s9 }
 0x164   :  { %487 = vrot.lane.b32.xlu2 %v2511_v23, %s2099_s30  ;;  %v383_v40 = vpop.f32.mrf.mxu3 }
 0x166   :  { %v344_v38 = vpop.f32.mrf.mxu0  ;;  %v357_v63 = vpop.f32.mrf.mxu1 }
 0x16b   :  { %469 = vrot.lane.b32.xlu0 %v2509_v56, %s2098_s10  ;;  %471 = vrot.lane.b32.xlu1 %v2511_v23, %s2098_s10 }
 0x16c   :  { %507 = vrot.lane.b32.xlu2 %v2519_v10, %s2097_s9 }
 0x173   :  { %485 = vrot.lane.b32.xlu0 %v2509_v56, %s2099_s30  ;;  %391 = vrot.lane.b32.xlu1 %v2511_v23, %s2103_s17 }
 0x174   :  { %475 = vrot.lane.b32.xlu2 %v2519_v10, %s2098_s10 }
 0x17b   :  { %407 = vrot.lane.b32.xlu1 %v2511_v23, %s2104_s18  ;;  %503 = vrot.lane.b32.xlu0 %v2511_v23, %s2097_s9 }
 0x17c   :  { %491 = vrot.lane.b32.xlu2 %v2519_v10, %s2099_s30 }
 0x183   :  { %505 = vrot.lane.b32.xlu1 %v2539_v11, %s2097_s9  ;;  %423 = vrot.lane.b32.xlu0 %v2511_v23, %s2101_s15 }
 0x184   :  { %457 = vrot.lane.b32.xlu2 %v2539_v11, %s2100_s14 }
 0x18b   :  { %473 = vrot.lane.b32.xlu1 %v2539_v11, %s2098_s10  ;;  %439 = vrot.lane.b32.xlu0 %v2511_v23, %s2102_s16 }
 0x18c   :  { %427 = vrot.lane.b32.xlu2 %v2519_v10, %s2101_s15 }
 0x193   :  { %489 = vrot.lane.b32.xlu1 %v2539_v11, %s2099_s30  ;;  %455 = vrot.lane.b32.xlu0 %v2511_v23, %s2100_s14 }
 0x194   :  { %443 = vrot.lane.b32.xlu2 %v2519_v10, %s2102_s16 }
 0x19b   :  { %425 = vrot.lane.b32.xlu1 %v2539_v11, %s2101_s15  ;;  %459 = vrot.lane.b32.xlu0 %v2519_v10, %s2100_s14 }
 0x19c   :  { %393 = vrot.lane.b32.xlu2 %v2539_v11, %s2103_s17 }
 0x1a3   :  { %441 = vrot.lane.b32.xlu1 %v2539_v11, %s2102_s16  ;;  %395 = vrot.lane.b32.xlu0 %v2519_v10, %s2103_s17 }
 0x1a4   :  { %409 = vrot.lane.b32.xlu2 %v2539_v11, %s2104_s18 }
 0x1ab   :  { %421 = vrot.lane.b32.xlu1 %v2509_v56, %s2101_s15  ;;  %411 = vrot.lane.b32.xlu0 %v2519_v10, %s2104_s18 }
 0x1ac   :  { %437 = vrot.lane.b32.xlu2 %v2509_v56, %s2102_s16 }
 0x1b3   :  { %405 = vrot.lane.b32.xlu1 %v2509_v56, %s2104_s18  ;;  %389 = vrot.lane.b32.xlu0 %v2509_v56, %s2103_s17 }
 0x1b4   :  { %541 = vperm.xlu2 %1920, %v538_v12  }
 0x1be   :  { %v488_v13 = vpop.permute.xlu2 %487 }
 0x1c6   :  { %v508_v17 = vpop.permute.xlu2 %507 }
 0x1ce   :  { %v476_v19 = vpop.permute.xlu2 %475 }
 0x1d5   :  { %v2584_v22 = vpop.permute.xlu1 %453  ;;  %v502_v2 = vpop.permute.xlu0 %501 }
 0x1d6   :  { %v512_v3 = vsel %vm276_vm0, %v508_v17, %v502_v2  ;;  %v492_v46 = vpop.permute.xlu2 %491 }
 0x1d7   :  { %v516_v27 = vmul.f32 %v2266_v9, %v512_v3 }
 0x1d9   :  { %v536_v48 = vpack.c.bf16 %v516_v27, %v516_v27 }
 0x1db   :  { %v557_v29 = vsel %vm320_vm1, %v536_v48, 0 }
 0x1dc   :  { %601 = vmatpush.bf16.msrb.mxu3 %v557_v29 }
 0x1dd   :  { %v470_v24 = vpop.permute.xlu0 %469  ;;  %v472_v18 = vpop.permute.xlu1 %471 }
 0x1de   :  { %v480_v33 = vsel %vm234_vm2, %v476_v19, %v470_v24  ;;  %v2592_v41 = vpop.permute.xlu2 %457  ;;  %v479_v12 = vsel %vm234_vm2, %v470_v24, %v472_v18 }
 0x1df   :  { %v484_v51 = vmul.f32 %v480_v33, %v2295_v28  ;;  %v481_v29 = vmul.f32 %v479_v12, %v2336_v58 }
 0x1e5   :  { %v486_v49 = vpop.permute.xlu0 %485  ;;  %v2594_v62 = vpop.permute.xlu1 %391 }
 0x1e6   :  { %v496_v50 = vsel %vm255_vm3, %v492_v46, %v486_v49  ;;  %v2602_v57 = vpop.permute.xlu2 %427  ;;  %v495_v63 = vsel %vm255_vm3, %v486_v49, %v488_v13 }
 0x1e7   :  { %v500_v4 = vmul.f32 %v496_v50, %v2299_v30  ;;  %v497_v27 = vmul.f32 %v495_v63, %v2333_v55 }
 0x1e9   :  { %v532_v52 = vpack.c.bf16 %v500_v4, %v484_v51  ;;  %v529_v51 = vpack.c.bf16 %v497_v27, %v481_v29 }
 0x1eb   :  { %602 = vmatpush.bf16.msrb.mxu3 %v532_v52 }
 0x1ed   :  { %v2600_v42 = vpop.permute.xlu1 %407  ;;  %v504_v40 = vpop.permute.xlu0 %503 }
 0x1ee   :  { %v511_v38 = vsel %vm276_vm0, %v502_v2, %v504_v40  ;;  %v444_v52 = vpop.permute.xlu2 %443 }
 0x1ef   :  { %v513_v34 = vmul.f32 %v2311_v43, %v511_v38 }
 0x1f1   :  { %v533_v3 = vpack.c.bf16 %v513_v34, %v513_v34 }
 0x1f3   :  { %v548_v48 = vsel %vm320_vm1, %v533_v3, 0 }
 0x1f4   :  { %562 = vmatpush.bf16.msrb.mxu0 %v548_v48 }
 0x1f5   :  { %v506_v33 = vpop.permute.xlu1 %505  ;;  %v2614_v50 = vpop.permute.xlu0 %423 }
 0x1f6   :  { %v509_v2 = vsel %vm276_vm0, %v506_v33, %v508_v17  ;;  %v510_v49 = vsel %vm276_vm0, %v504_v40, %v506_v33  ;;  %v394_v48 = vpop.permute.xlu2 %393 }
 0x1f7   :  { %v514_v24 = vmul.f32 %v2313_v44, %v510_v49  ;;  %v515_v4 = vmul.f32 %v2272_v16, %v509_v2 }
 0x1f8   :  { %563 = vmatpush.bf16.msrb.mxu0 %v529_v51 }
 0x1f9   :  { %v534_v38 = vpack.c.bf16 %v514_v24, %v514_v24  ;;  %v535_v63 = vpack.c.bf16 %v515_v4, %v515_v4 }
 0x1fb   :  { %v551_v34 = vsel %vm320_vm1, %v534_v38, 0  ;;  %v554_v12 = vsel %vm320_vm1, %v535_v63, 0 }
 0x1fc   :  { %575 = vmatpush.bf16.msrb.mxu1 %v551_v34  ;;  %588 = vmatpush.bf16.msrb.mxu2 %v554_v12 }
 0x1fd   :  { %v474_v3 = vpop.permute.xlu1 %473  ;;  %v440_v17 = vpop.permute.xlu0 %439 }
 0x1fe   :  { %v477_v40 = vsel %vm234_vm2, %v474_v3, %v476_v19  ;;  %v478_v27 = vsel %vm234_vm2, %v472_v18, %v474_v3  ;;  %v410_v3 = vpop.permute.xlu2 %409 }
 0x1ff   :  { %v482_v19 = vmul.f32 %v478_v27, %v2343_v61  ;;  %v483_v18 = vmul.f32 %v477_v40, %v2285_v25 }
 0x205   :  { %v490_v29 = vpop.permute.xlu1 %489  ;;  %v456_v33 = vpop.permute.xlu0 %455 }
 0x206   :  { %v493_v2 = vsel %vm255_vm3, %v490_v29, %v492_v46  ;;  %v494_v49 = vsel %vm255_vm3, %v488_v13, %v490_v29  ;;  %v462_v51 = vsel %vm213_vm4, %v456_v33, %v2592_v41  ;;  %v463_v24 = vsel %vm213_vm4, %v2584_v22, %v456_v33 }
 0x207   :  { %v498_v4 = vmul.f32 %v494_v49, %v2330_v54  ;;  %v499_v38 = vmul.f32 %v493_v2, %v2289_v26  ;;  %v465_v46 = vmul.f32 %v463_v24, %v2404_v59  ;;  %v466_v13 = vmul.f32 %v462_v51, %v2407_v60 }
 0x209   :  { %v530_v63 = vpack.c.bf16 %v498_v4, %v482_v19  ;;  %v531_v34 = vpack.c.bf16 %v499_v38, %v483_v18  ;;  %v525_v12 = vpack.c.bf16 %v465_v46, %v2509_v56  ;;  %v526_v40 = vpack.c.bf16 %v466_v13, %v2511_v23  ;;  %v438_v4 = vpop.permute.xlu2 %437 }
 0x20a   :  { %v414_v18 = vsel %vm150_vm8, %v2600_v42, %v410_v3 }
 0x20b   :  { %576 = vmatpush.bf16.msrb.mxu1 %v530_v63  ;;  %589 = vmatpush.bf16.msrb.mxu2 %v531_v34  ;;  %v398_v34 = vsel %vm129_vm7, %v2594_v62, %v394_v48 }
 0x20c   :  { %564 = vmatpush.bf16.msrb.mxu0 %v525_v12  ;;  %v419_v12 = vmul.f32 %v414_v18, %v2430_v20 }
 0x20d   :  { %v426_v29 = vpop.permute.xlu1 %425  ;;  %v460_v27 = vpop.permute.xlu0 %459 }
 0x20e   :  { %v461_v33 = vsel %vm213_vm4, %v2592_v41, %v460_v27  ;;  %v464_v2 = vsel %vm213_vm4, %v460_v27, %v2584_v22  ;;  %v429_v23 = vsel %vm171_vm5, %v426_v29, %v2602_v57  ;;  %v430_v41 = vsel %vm171_vm5, %v2614_v50, %v426_v29 }
 0x20f   :  { %v467_v49 = vmul.f32 %v461_v33, %v2349_v5  ;;  %v468_v56 = vmul.f32 %v464_v2, %v2352_v6  ;;  %577 = vmatpush.bf16.msrb.mxu1 %v526_v40  ;;  %v435_v38 = vmul.f32 %v430_v41, %v2387_v1  ;;  %v436_v46 = vmul.f32 %v429_v23, %v2377_v35 }
 0x210   :  { %v448_v40 = vsel %vm192_vm6, %v444_v52, %v438_v4  ;;  %v403_v33 = vmul.f32 %v398_v34, %v2426_v45  ;;  %v447_v2 = vsel %vm192_vm6, %v438_v4, %v440_v17 }
 0x211   :  { %v527_v51 = vpack.c.bf16 %v467_v49, %v2539_v11  ;;  %v528_v24 = vpack.c.bf16 %v468_v56, %v2519_v10  ;;  %v449_v56 = vmul.f32 %v448_v40, %v2440_v21  ;;  %v450_v41 = vmul.f32 %v447_v2, %v2443_v31 }
 0x212   :  { %v519_v23 = vpack.c.bf16 %v419_v12, %v403_v33 }
 0x213   :  { %590 = vmatpush.bf16.msrb.mxu2 %v527_v51  ;;  %603 = vmatpush.bf16.msrb.mxu3 %v528_v24 }
 0x215   :  { %v442_v22 = vpop.permute.xlu1 %441  ;;  %v396_v19 = vpop.permute.xlu0 %395 }
 0x216   :  { %v445_v11 = vsel %vm192_vm6, %v442_v22, %v444_v52  ;;  %v446_v10 = vsel %vm192_vm6, %v440_v17, %v442_v22  ;;  %v397_v49 = vsel %vm129_vm7, %v394_v48, %v396_v19 }
 0x217   :  { %v451_v13 = vmul.f32 %v446_v10, %v2390_v37  ;;  %v452_v63 = vmul.f32 %v445_v11, %v2381_v36  ;;  %v404_v48 = vmul.f32 %v397_v49, %v2459_v47 }
 0x219   :  { %v523_v29 = vpack.c.bf16 %v451_v13, %v435_v38  ;;  %v524_v27 = vpack.c.bf16 %v452_v63, %v436_v46 }
 0x21b   :  { %591 = vmatpush.bf16.msrb.mxu2 %v523_v29  ;;  %604 = vmatpush.bf16.msrb.mxu3 %v524_v27 }
 0x21d   :  { %v422_v51 = vpop.permute.xlu1 %421  ;;  %v412_v24 = vpop.permute.xlu0 %411 }
 0x21e   :  { %v431_v52 = vsel %vm171_vm5, %v422_v51, %v2614_v50  ;;  %v432_v17 = vsel %vm171_vm5, %v2602_v57, %v422_v51  ;;  %v413_v22 = vsel %vm150_vm8, %v410_v3, %v412_v24  ;;  %v537_v50 = vld [vmem:[%s3008_s4] sm:$0xf] }
 0x21f   :  { %v433_v18 = vmul.f32 %v432_v17, %v2448_v0  ;;  %v434_v11 = vmul.f32 %v431_v52, %v2451_v39  ;;  %v420_v10 = vmul.f32 %v413_v22, %v2462_v32  ;;  %592 = vmatpush.bf16.msrb.mxu2 %v519_v23 }
 0x221   :  { %v521_v4 = vpack.c.bf16 %v449_v56, %v433_v18  ;;  %v522_v38 = vpack.c.bf16 %v450_v41, %v434_v11  ;;  %v520_v46 = vpack.c.bf16 %v420_v10, %v404_v48 }
 0x222   :  { %1575 = vmatmul.msk.bf16.vlgmr.msrb.gmra.mxu2 %vm316_vm9, %v537_v50 }
 0x223   :  { %565 = vmatpush.bf16.msrb.mxu0 %v521_v4  ;;  %578 = vmatpush.bf16.msrb.mxu1 %v522_v38  ;;  %v764_v38 = vld [vmem:[%s3011_s7] sm:$0xff] }
 0x224   :  { %605 = vmatpush.bf16.msrb.mxu3 %v520_v46 }
 0x225   :  { %v406_v57 = vpop.permute.xlu1 %405  ;;  %v390_v3 = vpop.permute.xlu0 %389 }
 0x226   :  { %v415_v13 = vsel %vm150_vm8, %v406_v57, %v2600_v42  ;;  %v416_v63 = vsel %vm150_vm8, %v412_v24, %v406_v57  ;;  %v399_v34 = vsel %vm129_vm7, %v390_v3, %v2594_v62  ;;  %v400_v12 = vsel %vm129_vm7, %v396_v19, %v390_v3  ;;  %v542_v19 = vpop.permute.xlu2 %541 }
 0x227   :  { %v417_v29 = vmul.f32 %v416_v63, %v2482_v53  ;;  %v418_v27 = vmul.f32 %v415_v13, %v2485_v14  ;;  %v401_v40 = vmul.f32 %v400_v12, %v2488_v15  ;;  %v402_v33 = vmul.f32 %v399_v34, %v2491_v8  ;;  %1576 = vmatmul.msk.bf16.vlgmr.msrb.gmra.mxu3 %vm316_vm9, %v537_v50 }
 0x229   :  { %v517_v42 = vpack.c.bf16 %v417_v29, %v401_v40  ;;  %v518_v2 = vpack.c.bf16 %v418_v27, %v402_v33 }
 0x22b   :  { %566 = vmatpush.bf16.msrb.mxu0 %v517_v42  ;;  %579 = vmatpush.bf16.msrb.mxu1 %v518_v2 }
 0x22e   :  { %1573 = vmatmul.msk.bf16.vlgmr.msrb.gmra.mxu0 %vm316_vm9, %v537_v50  ;;  %1574 = vmatmul.msk.bf16.vlgmr.msrb.gmra.mxu1 %vm316_vm9, %v537_v50 }
 0x2a5   :  { %v594_v62 = vpop.f32.mrf.mxu2 }
 0x2a6   :  { %v595_v50 = vadd.f32 %v594_v62, %v542_v19 }
 0x2a8   :  { %v2749_v4 = vmax.f32 %v595_v50, 0.0 }
 0x2aa   :  { %v607_v49 = vpop.f32.mrf.mxu3 }
 0x2ab   :  { %v568_v56 = vpop.f32.mrf.mxu0  ;;  %v581_v51 = vpop.f32.mrf.mxu1  ;;  %v608_v48 = vadd.f32 %v607_v49, %v542_v19 }
 0x2ac   :  { %v569_v24 = vadd.f32 %v568_v56, %v542_v19  ;;  %v582_v23 = vadd.f32 %v581_v51, %v542_v19 }
 0x2ad   :  { %v596_v41 = vpop.f32.mrf.mxu2  ;;  %v2729_v10 = vmax.f32 %v608_v48, 0.0 }
 0x2ae   :  { %v2719_v52 = vmax.f32 %v569_v24, 0.0  ;;  %v2721_v17 = vmax.f32 %v582_v23, 0.0 }
 0x2b0   :  { %679 = vrot.lane.b32.xlu1 %v2719_v52, %s2100_s14  ;;  %727 = vrot.lane.b32.xlu0 %v2719_v52, %s2097_s9 }
 0x2b1   :  { %713 = vrot.lane.b32.xlu2 %v2721_v17, %s2099_s30 }
 0x2b2   :  { %v609_v22 = vpop.f32.mrf.mxu3 }
 0x2b3   :  { %v570_v18 = vpop.f32.mrf.mxu0  ;;  %v583_v11 = vpop.f32.mrf.mxu1 }
 0x2b8   :  { %695 = vrot.lane.b32.xlu0 %v2719_v52, %s2098_s10  ;;  %649 = vrot.lane.b32.xlu1 %v2721_v17, %s2101_s15 }
 0x2b9   :  { %733 = vrot.lane.b32.xlu2 %v2729_v10, %s2097_s9 }
 0x2c0   :  { %711 = vrot.lane.b32.xlu0 %v2719_v52, %s2099_s30  ;;  %665 = vrot.lane.b32.xlu1 %v2721_v17, %s2102_s16 }
 0x2c1   :  { %701 = vrot.lane.b32.xlu2 %v2729_v10, %s2098_s10 }
 0x2c8   :  { %697 = vrot.lane.b32.xlu1 %v2721_v17, %s2098_s10  ;;  %729 = vrot.lane.b32.xlu0 %v2721_v17, %s2097_s9 }
 0x2c9   :  { %717 = vrot.lane.b32.xlu2 %v2729_v10, %s2099_s30 }
 0x2d0   :  { %731 = vrot.lane.b32.xlu1 %v2749_v4, %s2097_s9  ;;  %617 = vrot.lane.b32.xlu0 %v2721_v17, %s2103_s17 }
 0x2d1   :  { %683 = vrot.lane.b32.xlu2 %v2749_v4, %s2100_s14 }
 0x2d8   :  { %699 = vrot.lane.b32.xlu1 %v2749_v4, %s2098_s10  ;;  %633 = vrot.lane.b32.xlu0 %v2721_v17, %s2104_s18  ;;  %s1557_s10 = sshll.u32 %s3017_s13, 4  ;;  %s1558_s10 = int_to_ptr.hbm [resolvable:$true] %s1557_s10 }
 0x2d9   :  { %651 = vrot.lane.b32.xlu2 %v2749_v4, %s2101_s15 }
 0x2e0   :  { %715 = vrot.lane.b32.xlu1 %v2749_v4, %s2099_s30  ;;  %685 = vrot.lane.b32.xlu0 %v2729_v10, %s2100_s14 }
 0x2e1   :  { %667 = vrot.lane.b32.xlu2 %v2749_v4, %s2102_s16 }
 0x2e8   :  { %647 = vrot.lane.b32.xlu1 %v2719_v52, %s2101_s15  ;;  %653 = vrot.lane.b32.xlu0 %v2729_v10, %s2101_s15 }
 0x2e9   :  { %621 = vrot.lane.b32.xlu2 %v2729_v10, %s2103_s17 }
 0x2f0   :  { %619 = vrot.lane.b32.xlu1 %v2749_v4, %s2103_s17  ;;  %669 = vrot.lane.b32.xlu0 %v2729_v10, %s2102_s16 }
 0x2f1   :  { %637 = vrot.lane.b32.xlu2 %v2729_v10, %s2104_s18 }
 0x2f8   :  { %635 = vrot.lane.b32.xlu1 %v2749_v4, %s2104_s18  ;;  %681 = vrot.lane.b32.xlu0 %v2721_v17, %s2100_s14 }
 0x2f9   :  { %663 = vrot.lane.b32.xlu2 %v2719_v52, %s2102_s16 }
 0x300   :  { %631 = vrot.lane.b32.xlu1 %v2719_v52, %s2104_s18  ;;  %615 = vrot.lane.b32.xlu0 %v2719_v52, %s2103_s17 }
 0x301   :  { %767 = vperm.xlu2 %1920, %v764_v38  }
 0x30b   :  { %v714_v46 = vpop.permute.xlu2 %713 }
 0x313   :  { %v734_v57 = vpop.permute.xlu2 %733 }
 0x31b   :  { %v702_v63 = vpop.permute.xlu2 %701 }
 0x322   :  { %v2794_v3 = vpop.permute.xlu1 %679  ;;  %v728_v13 = vpop.permute.xlu0 %727 }
 0x323   :  { %v738_v34 = vsel %vm276_vm0, %v734_v57, %v728_v13  ;;  %v718_v42 = vpop.permute.xlu2 %717 }
 0x324   :  { %v742_v12 = vmul.f32 %v2266_v9, %v738_v34 }
 0x326   :  { %v762_v29 = vpack.c.bf16 %v742_v12, %v742_v12 }
 0x328   :  { %v783_v27 = vsel %vm320_vm1, %v762_v29, 0 }
 0x329   :  { %827 = vmatpush.bf16.msra.mxu3 %v783_v27 }
 0x32a   :  { %v696_v40 = vpop.permute.xlu0 %695  ;;  %v2800_v33 = vpop.permute.xlu1 %649 }
 0x32b   :  { %v706_v2 = vsel %vm234_vm2, %v702_v63, %v696_v40  ;;  %v2810_v24 = vpop.permute.xlu2 %683 }
 0x32c   :  { %v710_v56 = vmul.f32 %v706_v2, %v2295_v28 }
 0x332   :  { %v712_v62 = vpop.permute.xlu0 %711  ;;  %v2804_v19 = vpop.permute.xlu1 %665 }
 0x333   :  { %v722_v49 = vsel %vm255_vm3, %v718_v42, %v712_v62  ;;  %v721_v11 = vsel %vm255_vm3, %v712_v62, %v714_v46  ;;  %v652_v34 = vpop.permute.xlu2 %651 }
 0x334   :  { %v726_v9 = vmul.f32 %v722_v49, %v2299_v30  ;;  %v723_v38 = vmul.f32 %v721_v11, %v2333_v55 }
 0x336   :  { %v758_v51 = vpack.c.bf16 %v726_v9, %v710_v56 }
 0x338   :  { %828 = vmatpush.bf16.msra.mxu3 %v758_v51 }
 0x33a   :  { %v698_v23 = vpop.permute.xlu1 %697  ;;  %v730_v41 = vpop.permute.xlu0 %729 }
 0x33b   :  { %v737_v22 = vsel %vm276_vm0, %v728_v13, %v730_v41  ;;  %v705_v48 = vsel %vm234_vm2, %v696_v40, %v698_v23 }
 0x33c   :  { %v739_v18 = vmul.f32 %v2311_v43, %v737_v22  ;;  %v707_v30 = vmul.f32 %v705_v48, %v2336_v58 }
 0x33e   :  { %v759_v28 = vpack.c.bf16 %v739_v18, %v739_v18  ;;  %v755_v27 = vpack.c.bf16 %v723_v38, %v707_v30 }
 0x340   :  { %v774_v50 = vsel %vm320_vm1, %v759_v28, 0 }
 0x341   :  { %788 = vmatpush.bf16.msra.mxu0 %v774_v50 }
 0x342   :  { %v732_v12 = vpop.permute.xlu1 %731  ;;  %v2822_v29 = vpop.permute.xlu0 %617 }
 0x343   :  { %v735_v13 = vsel %vm276_vm0, %v732_v12, %v734_v57  ;;  %v736_v43 = vsel %vm276_vm0, %v730_v41, %v732_v12  ;;  %v668_v57 = vpop.permute.xlu2 %667 }
 0x344   :  { %v740_v40 = vmul.f32 %v2313_v44, %v736_v43  ;;  %v741_v58 = vmul.f32 %v2272_v16, %v735_v13  ;;  %v672_v13 = vsel %vm192_vm6, %v2804_v19, %v668_v57 }
 0x345   :  { %789 = vmatpush.bf16.msra.mxu0 %v755_v27 }
 0x346   :  { %v760_v2 = vpack.c.bf16 %v740_v40, %v740_v40  ;;  %v761_v62 = vpack.c.bf16 %v741_v58, %v741_v58 }
 0x348   :  { %v777_v55 = vsel %vm320_vm1, %v760_v2, 0  ;;  %v780_v49 = vsel %vm320_vm1, %v761_v62, 0 }
 0x349   :  { %801 = vmatpush.bf16.msra.mxu1 %v777_v55  ;;  %814 = vmatpush.bf16.msra.mxu2 %v780_v49 }
 0x34a   :  { %v700_v56 = vpop.permute.xlu1 %699  ;;  %v2832_v9 = vpop.permute.xlu0 %633 }
 0x34b   :  { %v703_v51 = vsel %vm234_vm2, %v700_v56, %v702_v63  ;;  %v704_v44 = vsel %vm234_vm2, %v698_v23, %v700_v56 }
 0x34c   :  { %v708_v63 = vmul.f32 %v704_v44, %v2343_v61  ;;  %v709_v23 = vmul.f32 %v703_v51, %v2285_v25  ;;  %v656_v25 = vsel %vm171_vm5, %v2800_v33, %v652_v34 }
 0x34d   :  { %v661_v43 = vmul.f32 %v656_v25, %v2387_v1 }
 0x352   :  { %v716_v16 = vpop.permute.xlu1 %715  ;;  %v686_v41 = vpop.permute.xlu0 %685 }
 0x353   :  { %v719_v22 = vsel %vm255_vm3, %v716_v16, %v718_v42  ;;  %v720_v48 = vsel %vm255_vm3, %v714_v46, %v716_v16  ;;  %v687_v18 = vsel %vm213_vm4, %v2810_v24, %v686_v41  ;;  %v690_v11 = vsel %vm213_vm4, %v686_v41, %v2794_v3  ;;  %v2852_v42 = vpop.permute.xlu2 %621 }
 0x354   :  { %v724_v28 = vmul.f32 %v720_v48, %v2330_v54  ;;  %v725_v30 = vmul.f32 %v719_v22, %v2289_v26  ;;  %v694_v46 = vmul.f32 %v690_v11, %v2352_v6  ;;  %v693_v50 = vmul.f32 %v687_v18, %v2349_v5 }
 0x355   :  { %v677_v26 = vmul.f32 %v672_v13, %v2390_v37 }
 0x356   :  { %v756_v38 = vpack.c.bf16 %v724_v28, %v708_v63  ;;  %v757_v12 = vpack.c.bf16 %v725_v30, %v709_v23  ;;  %v754_v61 = vpack.c.bf16 %v694_v46, %v2729_v10  ;;  %v753_v5 = vpack.c.bf16 %v693_v50, %v2749_v4 }
 0x357   :  { %v749_v27 = vpack.c.bf16 %v677_v26, %v661_v43 }
 0x358   :  { %802 = vmatpush.bf16.msra.mxu1 %v756_v38  ;;  %815 = vmatpush.bf16.msra.mxu2 %v757_v12 }
 0x359   :  { %829 = vmatpush.bf16.msra.mxu3 %v754_v61 }
 0x35a   :  { %v648_v54 = vpop.permute.xlu1 %647  ;;  %v654_v6 = vpop.permute.xlu0 %653 }
 0x35b   :  { %v638_v40 = vpop.permute.xlu2 %637  ;;  %v655_v10 = vsel %vm171_vm5, %v652_v34, %v654_v6  ;;  %v657_v56 = vsel %vm171_vm5, %v648_v54, %v2800_v33 }
 0x35c   :  { %816 = vmatpush.bf16.msra.mxu2 %v753_v5  ;;  %v662_v37 = vmul.f32 %v655_v10, %v2377_v35  ;;  %v660_v63 = vmul.f32 %v657_v56, %v2451_v39  ;;  %v763_v39 = vld [vmem:[%s3010_s6] sm:$0xf]  ;;  %v1852_v56 = vld [vmem:[#allocation7 + $0x70] sm:$0xff] }
 0x360   :  { %817 = vmatpush.bf16.msra.mxu2 %v749_v27 }
 0x362   :  { %v620_v58 = vpop.permute.xlu1 %619  ;;  %v670_v2 = vpop.permute.xlu0 %669 }
 0x363   :  { %v671_v62 = vsel %vm192_vm6, %v668_v57, %v670_v2  ;;  %v623_v1 = vsel %vm129_vm7, %v620_v58, %v2852_v42  ;;  %v624_v4 = vsel %vm129_vm7, %v2822_v29, %v620_v58  ;;  %v664_v34 = vpop.permute.xlu2 %663 }
 0x364   :  { %v678_v55 = vmul.f32 %v671_v62, %v2381_v36  ;;  %v629_v57 = vmul.f32 %v624_v4, %v2426_v45  ;;  %v630_v35 = vmul.f32 %v623_v1, %v2459_v47  ;;  %v674_v36 = vsel %vm192_vm6, %v670_v2, %v664_v34 }
 0x365   :  { %v673_v11 = vsel %vm192_vm6, %v664_v34, %v2804_v19  ;;  %v675_v23 = vmul.f32 %v674_v36, %v2440_v21  ;;  %v1844_v34 = vld [vmem:[#allocation7 + $0x30] sm:$0xff]  ;;  %v1843_v36 = vld [vmem:[#allocation7 + $0x28] sm:$0xff] }
 0x366   :  { %v750_v49 = vpack.c.bf16 %v678_v55, %v662_v37 }
 0x368   :  { %830 = vmatpush.bf16.msra.mxu3 %v750_v49 }
 0x36a   :  { %v636_v51 = vpop.permute.xlu1 %635  ;;  %v682_v44 = vpop.permute.xlu0 %681 }
 0x36b   :  { %v639_v16 = vsel %vm150_vm8, %v636_v51, %v638_v40  ;;  %v640_v41 = vsel %vm150_vm8, %v2832_v9, %v636_v51  ;;  %v688_v33 = vsel %vm213_vm4, %v682_v44, %v2810_v24  ;;  %v689_v45 = vsel %vm213_vm4, %v2794_v3, %v682_v44  ;;  %v1851_v51 = vld [vmem:[#allocation7 + $0x68] sm:$0xff] }
 0x36c   :  { %v645_v47 = vmul.f32 %v640_v41, %v2430_v20  ;;  %v646_v22 = vmul.f32 %v639_v16, %v2462_v32  ;;  %v691_v48 = vmul.f32 %v689_v45, %v2404_v59  ;;  %v692_v18 = vmul.f32 %v688_v33, %v2407_v60  ;;  %v1859_v44 = vld [vmem:[#allocation7 + $0xa8] sm:$0xff]  ;;  %v1842_v41 = vld [vmem:[#allocation7 + $0x20] sm:$0xff] }
 0x36d   :  { %v658_v24 = vsel %vm171_vm5, %v654_v6, %v648_v54  ;;  %v676_v59 = vmul.f32 %v673_v11, %v2443_v31  ;;  %v1867_v16 = vld [vmem:[#allocation7 + $0xe8] sm:$0xff]  ;;  %v1850_v33 = vld [vmem:[#allocation7 + $0x60] sm:$0xff]  ;;  %v1865_v11 = vld [vmem:[#allocation7 + $0xd8] sm:$0xff] }
 0x36e   :  { %v751_v3 = vpack.c.bf16 %v691_v48, %v2719_v52  ;;  %v752_v20 = vpack.c.bf16 %v692_v18, %v2721_v17  ;;  %v745_v32 = vpack.c.bf16 %v645_v47, %v629_v57  ;;  %v746_v28 = vpack.c.bf16 %v646_v22, %v630_v35  ;;  %v1860_v57 = vld [vmem:[#allocation7 + $0xb0] sm:$0xff]  ;;  %v1858_v45 = vld [vmem:[#allocation7 + $0xa0] sm:$0xff]  ;;  %v1841_v22 = vld [vmem:[#allocation7 + $0x18] sm:$0xff] }
 0x36f   :  { %v659_v60 = vmul.f32 %v658_v24, %v2448_v0  ;;  %v748_v52 = vpack.c.bf16 %v676_v59, %v660_v63  ;;  %v1868_v35 = vld [vmem:[#allocation7 + $0xf0] sm:$0xff]  ;;  %v1866_v47 = vld [vmem:[#allocation7 + $0xe0] sm:$0xff]  ;;  %v1849_v48 = vld [vmem:[#allocation7 + $0x58] sm:$0xff] }
 0x370   :  { %790 = vmatpush.bf16.msra.mxu0 %v751_v3  ;;  %803 = vmatpush.bf16.msra.mxu1 %v752_v20  ;;  %v1857_v18 = vld [vmem:[#allocation7 + $0x98] sm:$0xff]  ;;  %v1840_v63 = vld [vmem:[#allocation7 + $0x10] sm:$0xff]  ;;  %v1839_v20 = vld [vmem:[#allocation7 + $0x8] sm:$0xff] }
 0x371   :  { %818 = vmatpush.bf16.msra.mxu2 %v745_v32  ;;  %831 = vmatpush.bf16.msra.mxu3 %v746_v28  ;;  %v747_v30 = vpack.c.bf16 %v675_v23, %v659_v60  ;;  %v1848_v24 = vld [vmem:[#allocation7 + $0x50] sm:$0xff]  ;;  %v1847_v32 = vld [vmem:[#allocation7 + $0x48] sm:$0xff]  ;;  %v1838_v60 = vld [vmem:[#allocation7] sm:$0xff] }
 0x372   :  { %v632_v19 = vpop.permute.xlu1 %631  ;;  %v616_v21 = vpop.permute.xlu0 %615  ;;  %v1856_v23 = vld [vmem:[#allocation7 + $0x90] sm:$0xff]  ;;  %v1855_v28 = vld [vmem:[#allocation7 + $0x88] sm:$0xff] }
 0x373   :  { %v641_v17 = vsel %vm150_vm8, %v632_v19, %v2832_v9  ;;  %v642_v31 = vsel %vm150_vm8, %v638_v40, %v632_v19  ;;  %v625_v0 = vsel %vm129_vm7, %v616_v21, %v2822_v29  ;;  %v626_v46 = vsel %vm129_vm7, %v2852_v42, %v616_v21  ;;  %v1861_v42 = vld [vmem:[#allocation7 + $0xb8] sm:$0xff]  ;;  %v1864_v3 = vld [vmem:[#allocation7 + $0xd0] sm:$0xff]  ;;  %v1863_v59 = vld [vmem:[#allocation7 + $0xc8] sm:$0xff] }
 0x374   :  { %v643_v50 = vmul.f32 %v642_v31, %v2482_v53  ;;  %v644_v38 = vmul.f32 %v641_v17, %v2485_v14  ;;  %v627_v12 = vmul.f32 %v626_v46, %v2488_v15  ;;  %v628_v13 = vmul.f32 %v625_v0, %v2491_v8  ;;  %1579 = vmatmul.msk.bf16.vlgmr.msra.gmra.mxu2 %vm316_vm9, %v763_v39  ;;  %v1845_v53 = vld [vmem:[#allocation7 + $0x38] sm:$0xff]  ;;  %v768_v8 = vpop.permute.xlu2 %767  ;;  %v1854_v19 = vld [vmem:[#allocation7 + $0x80] sm:$0xff]  ;;  %v1876_v0 = vld [vmem:[#allocation8 + $0x30] sm:$0xff] }
 0x375   :  { %1580 = vmatmul.msk.bf16.vlgmr.msra.gmra.mxu3 %vm316_vm9, %v763_v39  ;;  %791 = vmatpush.bf16.msra.mxu0 %v747_v30  ;;  %v1853_v14 = vld [vmem:[#allocation7 + $0x78] sm:$0xff]  ;;  %v1862_v21 = vld [vmem:[#allocation7 + $0xc0] sm:$0xff]  ;;  %v1884_v46 = vld [vmem:[#allocation8 + $0x70] sm:$0xff] }
 0x376   :  { %804 = vmatpush.bf16.msra.mxu1 %v748_v52  ;;  %v743_v9 = vpack.c.bf16 %v643_v50, %v627_v12  ;;  %v744_v29 = vpack.c.bf16 %v644_v38, %v628_v13  ;;  %v1869_v15 = vld [vmem:[#allocation7 + $0xf8] sm:$0xff]  ;;  %1181 = vmatpush.bf16.msrb.mxu2 %v1861_v42  ;;  %v1892_v50 = vld [vmem:[#allocation8 + $0xb0] sm:$0xff]  ;;  %v1875_v12 = vld [vmem:[#allocation8 + $0x28] sm:$0xff] }
 0x377   :  { %1194 = vmatpush.bf16.msrb.mxu3 %v1869_v15  ;;  %v1877_v30 = vld [vmem:[#allocation8 + $0x38] sm:$0xff]  ;;  %v1900_v38 = vld [vmem:[#allocation8 + $0xf0] sm:$0xff]  ;;  %v1883_v13 = vld [vmem:[#allocation8 + $0x68] sm:$0xff] }
 0x378   :  { %v1885_v52 = vld [vmem:[#allocation8 + $0x78] sm:$0xff]  ;;  %v1890_v42 = vld [vmem:[#allocation8 + $0xa0] sm:$0xff] }
 0x379   :  { %792 = vmatpush.bf16.msra.mxu0 %v743_v9  ;;  %v1893_v17 = vld [vmem:[#allocation8 + $0xb8] sm:$0xff]  ;;  %v1891_v9 = vld [vmem:[#allocation8 + $0xa8] sm:$0xff]  ;;  %v1898_v15 = vld [vmem:[#allocation8 + $0xe0] sm:$0xff] }
 0x37a   :  { %805 = vmatpush.bf16.msra.mxu1 %v744_v29  ;;  %1182 = vmatpush.bf16.msrb.mxu2 %v1860_v57  ;;  %v1901_v31 = vld [vmem:[#allocation8 + $0xf8] sm:$0xff]  ;;  %v1899_v29 = vld [vmem:[#allocation8 + $0xe8] sm:$0xff] }
 0x37b   :  { %1195 = vmatpush.bf16.msrb.mxu3 %v1868_v35  ;;  %v1870_v35 = vld [vmem:[#allocation8] sm:$0xff] }
 0x37c   :  { %1577 = vmatmul.msk.bf16.vlgmr.msra.gmra.mxu0 %vm316_vm9, %v763_v39 }
 0x37d   :  { %1578 = vmatmul.msk.bf16.vlgmr.msra.gmra.mxu1 %vm316_vm9, %v763_v39  ;;  %1155 = vmatpush.bf16.msrb.mxu0 %v1845_v53  ;;  %v1846_v39 = vld [vmem:[#allocation7 + $0x40] sm:$0xff] }
 0x37e   :  { %1168 = vmatpush.bf16.msrb.mxu1 %v1853_v14  ;;  %1183 = vmatpush.bf16.msrb.mxu2 %v1859_v44  ;;  %v1874_v53 = vld [vmem:[#allocation8 + $0x20] sm:$0xff] }
 0x37f   :  { %1196 = vmatpush.bf16.msrb.mxu3 %v1867_v16  ;;  %v1882_v14 = vld [vmem:[#allocation8 + $0x60] sm:$0xff] }
 0x380   :  { %v1894_v44 = vld [vmem:[#allocation8 + $0xc0] sm:$0xff] }
 0x381   :  { %1156 = vmatpush.bf16.msrb.mxu0 %v1844_v34  ;;  %v1887_v34 = vld [vmem:[#allocation8 + $0x88] sm:$0xff] }
 0x382   :  { %1169 = vmatpush.bf16.msrb.mxu1 %v1852_v56  ;;  %1184 = vmatpush.bf16.msrb.mxu2 %v1858_v45  ;;  %v1895_v56 = vld [vmem:[#allocation8 + $0xc8] sm:$0xff] }
 0x383   :  { %1197 = vmatpush.bf16.msrb.mxu3 %v1866_v47 }
 0x385   :  { %1157 = vmatpush.bf16.msrb.mxu0 %v1843_v36  ;;  %v1878_v36 = vld [vmem:[#allocation8 + $0x40] sm:$0xff] }
 0x386   :  { %1170 = vmatpush.bf16.msrb.mxu1 %v1851_v51  ;;  %1185 = vmatpush.bf16.msrb.mxu2 %v1857_v18  ;;  %v1886_v51 = vld [vmem:[#allocation8 + $0x80] sm:$0xff] }
 0x387   :  { %1198 = vmatpush.bf16.msrb.mxu3 %v1865_v11 }
 0x389   :  { %1158 = vmatpush.bf16.msrb.mxu0 %v1842_v41 }
 0x38a   :  { %1171 = vmatpush.bf16.msrb.mxu1 %v1850_v33  ;;  %1186 = vmatpush.bf16.msrb.mxu2 %v1856_v23 }
 0x38b   :  { %1199 = vmatpush.bf16.msrb.mxu3 %v1864_v3 }
 0x38d   :  { %1159 = vmatpush.bf16.msrb.mxu0 %v1841_v22 }
 0x38e   :  { %1172 = vmatpush.bf16.msrb.mxu1 %v1849_v48  ;;  %1187 = vmatpush.bf16.msrb.mxu2 %v1855_v28 }
 0x38f   :  { %1200 = vmatpush.bf16.msrb.mxu3 %v1863_v59 }
 0x391   :  { %1160 = vmatpush.bf16.msrb.mxu0 %v1840_v63 }
 0x392   :  { %1173 = vmatpush.bf16.msrb.mxu1 %v1848_v24  ;;  %1188 = vmatpush.bf16.msrb.mxu2 %v1854_v19 }
 0x393   :  { %1201 = vmatpush.bf16.msrb.mxu3 %v1862_v21 }
 0x395   :  { %1161 = vmatpush.bf16.msrb.mxu0 %v1839_v20 }
 0x396   :  { %1174 = vmatpush.bf16.msrb.mxu1 %v1847_v32  ;;  %1493 = vmatpush.bf16.msra.mxu2 %v1893_v17 }
 0x397   :  { %1506 = vmatpush.bf16.msra.mxu3 %v1901_v31 }
 0x399   :  { %1162 = vmatpush.bf16.msrb.mxu0 %v1838_v60 }
 0x39a   :  { %1175 = vmatpush.bf16.msrb.mxu1 %v1846_v39  ;;  %1494 = vmatpush.bf16.msra.mxu2 %v1892_v50 }
 0x39b   :  { %1507 = vmatpush.bf16.msra.mxu3 %v1900_v38 }
 0x39d   :  { %1467 = vmatpush.bf16.msra.mxu0 %v1877_v30 }
 0x39e   :  { %1480 = vmatpush.bf16.msra.mxu1 %v1885_v52  ;;  %1495 = vmatpush.bf16.msra.mxu2 %v1891_v9 }
 0x39f   :  { %1508 = vmatpush.bf16.msra.mxu3 %v1899_v29 }
 0x3a1   :  { %1468 = vmatpush.bf16.msra.mxu0 %v1876_v0 }
 0x3a2   :  { %1481 = vmatpush.bf16.msra.mxu1 %v1884_v46  ;;  %1496 = vmatpush.bf16.msra.mxu2 %v1890_v42 }
 0x3a3   :  { %1509 = vmatpush.bf16.msra.mxu3 %v1898_v15 }
 0x3a5   :  { %1469 = vmatpush.bf16.msra.mxu0 %v1875_v12 }
 0x3a6   :  { %1482 = vmatpush.bf16.msra.mxu1 %v1883_v13 }
 0x3a9   :  { %1470 = vmatpush.bf16.msra.mxu0 %v1874_v53 }
 0x3aa   :  { %1483 = vmatpush.bf16.msra.mxu1 %v1882_v14 }
 0x3f7   :  { %v820_v61 = vpop.f32.mrf.mxu2 }
 0x3f8   :  { %v2933_v25 = vadd.f32 %v820_v61, %v768_v8  ;;  %v833_v26 = vpop.f32.mrf.mxu3  ;;  %v1881_v61 = vld [vmem:[#allocation8 + $0x58] sm:$0xff] }
 0x3f9   :  { %v2935_v54 = vadd.f32 %v833_v26, %v768_v8  ;;  %v794_v6 = vpop.f32.mrf.mxu0  ;;  %v1889_v26 = vld [vmem:[#allocation8 + $0x98] sm:$0xff]  ;;  %1484 = vmatpush.bf16.msra.mxu1 %v1881_v61 }
 0x3fa   :  { %v839_v5 = vmax.f32 %v2933_v25, 0.0  ;;  %v2938_v43 = vadd.f32 %v794_v6, %v768_v8  ;;  %v807_v27 = vpop.f32.mrf.mxu1  ;;  %v1897_v6 = vld [vmem:[#allocation8 + $0xd8] sm:$0xff]  ;;  %1497 = vmatpush.bf16.msra.mxu2 %v1889_v26 }
 0x3fb   :  { %v840_v40 = vmax.f32 %v2935_v54, 0.0  ;;  %v2941_v10 = vadd.f32 %v807_v27, %v768_v8  ;;  %v1873_v8 = vld [vmem:[#allocation8 + $0x18] sm:$0xff]  ;;  %v1872_v27 = vld [vmem:[#allocation8 + $0x10] sm:$0xff]  ;;  %1510 = vmatpush.bf16.msra.mxu3 %v1897_v6 }
 0x3fc   :  { %v837_v58 = vmax.f32 %v2938_v43, 0.0  ;;  %1471 = vmatpush.bf16.msra.mxu0 %v1873_v8  ;;  %v1957_v8 = vld [vmem:[#allocation2] sm:$0xff]  ;;  %v1958_v26 = vld [vmem:[#allocation2 + $0x18] sm:$0xff] }
 0x3fd   :  { %v838_v2 = vmax.f32 %v2941_v10, 0.0  ;;  %v1936_v62 = vpack.i.bf16 %v840_v40, %v839_v5  ;;  %v1207_v61 = vpack.c.bf16 %v1957_v8, %v1957_v8  ;;  %v1210_v6 = vpack.c.bf16 %v1958_v26, %v1958_v26 }
 0x3ff   :  { %1937 = vrot.lane.b32.xlu2 %v1936_v62, %s2099_s30  ;;  %1927 = vrot.lane.b32.xlu0 %v1936_v62, %s2100_s14  ;;  %v822_v37 = vpop.f32.mrf.mxu2  ;;  %v1921_v55 = vpack.i.bf16 %v838_v2, %v837_v58 }
 0x400   :  { %v835_v49 = vpop.f32.mrf.mxu3  ;;  %v1888_v37 = vld [vmem:[#allocation8 + $0x90] sm:$0xff]  ;;  %1472 = vmatpush.bf16.msra.mxu0 %v1872_v27  ;;  %v1959_v27 = vld [vmem:[#allocation2 + $0x8] sm:$0xff] }
 0x401   :  { %1922 = vrot.lane.b32.xlu1 %v1921_v55, %s2100_s14  ;;  %v796_v1 = vpop.f32.mrf.mxu0  ;;  %v957_v49 = vld [vmem:[%s3012_s8] sm:$0xff]  ;;  %1498 = vmatpush.bf16.msra.mxu2 %v1888_v37  ;;  %v1209_v37 = vpack.c.bf16 %v1960_v7, %v1960_v7 }
 0x402   :  { %v809_v4 = vpop.f32.mrf.mxu1  ;;  %v1871_v1 = vld [vmem:[#allocation8 + $0x8] sm:$0xff] }
 0x403   :  { %v1879_v4 = vld [vmem:[#allocation8 + $0x48] sm:$0xff] }
 0x404   :  { %1473 = vmatpush.bf16.msra.mxu0 %v1871_v1 }
 0x405   :  { %1499 = vmatpush.bf16.msra.mxu2 %v1887_v34  ;;  %v1542_v34 = vld [vmem:[%s3016_s12] sm:$0xff] }
 0x407   :  { %1947 = vrot.lane.b32.xlu2 %v1921_v55, %s2097_s9  ;;  %1932 = vrot.lane.b32.xlu0 %v1921_v55, %s2099_s30  ;;  %v1896_v55 = vld [vmem:[#allocation8 + $0xd0] sm:$0xff] }
 0x408   :  { %1511 = vmatpush.bf16.msra.mxu3 %v1896_v55  ;;  %1474 = vmatpush.bf16.msra.mxu0 %v1870_v35 }
 0x409   :  { %1942 = vrot.lane.b32.xlu1 %v1936_v62, %s2097_s9  ;;  %v1880_v62 = vld [vmem:[#allocation8 + $0x50] sm:$0xff]  ;;  %1500 = vmatpush.bf16.msra.mxu2 %v1886_v51 }
 0x40a   :  { %1485 = vmatpush.bf16.msra.mxu1 %v1880_v62  ;;  %v1208_v62 = vpack.c.bf16 %v1959_v27, %v1959_v27 }
 0x40c   :  { %1512 = vmatpush.bf16.msra.mxu3 %v1895_v56 }
 0x40e   :  { %1486 = vmatpush.bf16.msra.mxu1 %v1879_v4 }
 0x40f   :  { %960 = vperm.xlu0 %1951, %v957_v49  }
 0x410   :  { %1513 = vmatpush.bf16.msra.mxu3 %v1894_v44 }
 0x411   :  { %1545 = vperm.xlu1 %1952, %v1542_v34  }
 0x412   :  { %1487 = vmatpush.bf16.msra.mxu1 %v1878_v36 }
 0x459   :  { %v1938_v57 = vpop.permute.xlu2 %1937 }
 0x45a   :  { %v1940_v18 = vunpack.i.h.bf16 %v1938_v57  ;;  %v1939_v11 = vunpack.i.l.bf16 %v1938_v57 }
 0x45c   :  { %v865_v19 = vsel %vm255_vm3, %v1939_v11, %v1940_v18 }
 0x461   :  { %v1948_v48 = vpop.permute.xlu2 %1947 }
 0x462   :  { %v1950_v20 = vunpack.i.h.bf16 %v1948_v48  ;;  %v1949_v28 = vunpack.i.l.bf16 %v1948_v48 }
 0x464   :  { %v883_v10 = vsel %vm276_vm0, %v1949_v28, %v1950_v20 }
 0x471   :  { %v1928_v16 = vpop.permute.xlu0 %1927 }
 0x472   :  { %v1930_v41 = vunpack.i.h.bf16 %v1928_v16  ;;  %v1929_v33 = vunpack.i.l.bf16 %v1928_v16 }
 0x473   :  { %v1923_v45 = vpop.permute.xlu1 %1922 }
 0x474   :  { %v1925_v47 = vunpack.i.h.bf16 %v1923_v45  ;;  %v1924_v22 = vunpack.i.l.bf16 %v1923_v45  ;;  %v849_v63 = vsel %vm213_vm4, %v1929_v33, %v1930_v41 }
 0x475   :  { %v855_v59 = vmax.f32 %v839_v5, %v849_v63 }
 0x476   :  { %v850_v24 = vsel %vm213_vm4, %v1925_v47, %v1929_v33  ;;  %v851_v23 = vsel %vm213_vm4, %v1924_v22, %v1925_v47  ;;  %v852_v3 = vsel %vm213_vm4, %v1930_v41, %v1924_v22 }
 0x477   :  { %v853_v21 = vmax.f32 %v837_v58, %v851_v23  ;;  %v854_v30 = vmax.f32 %v838_v2, %v850_v24  ;;  %v856_v52 = vmax.f32 %v840_v40, %v852_v3  ;;  %v871_v40 = vmax.f32 %v855_v59, %v865_v19  ;;  %v1519_v59 = vld [vmem:[%s3015_s11] sm:$0xf] }
 0x479   :  { %v1933_v32 = vpop.permute.xlu0 %1932 }
 0x47a   :  { %v1935_v60 = vunpack.i.h.bf16 %v1933_v32  ;;  %v1934_v39 = vunpack.i.l.bf16 %v1933_v32 }
 0x47b   :  { %v1943_v17 = vpop.permute.xlu1 %1942 }
 0x47c   :  { %v866_v31 = vsel %vm255_vm3, %v1935_v60, %v1939_v11  ;;  %v867_v25 = vsel %vm255_vm3, %v1934_v39, %v1935_v60  ;;  %v868_v5 = vsel %vm255_vm3, %v1940_v18, %v1934_v39  ;;  %v1945_v0 = vunpack.i.h.bf16 %v1943_v17 }
 0x47d   :  { %v869_v46 = vmax.f32 %v853_v21, %v867_v25  ;;  %v870_v43 = vmax.f32 %v854_v30, %v866_v31  ;;  %v872_v58 = vmax.f32 %v856_v52, %v868_v5  ;;  %v1944_v50 = vunpack.i.l.bf16 %v1943_v17 }
 0x47e   :  { %v884_v54 = vsel %vm276_vm0, %v1945_v0, %v1949_v28 }
 0x47f   :  { %v881_v2 = vsel %vm276_vm0, %v1944_v50, %v1945_v0  ;;  %v882_v38 = vsel %vm276_vm0, %v1950_v20, %v1944_v50  ;;  %v888_v12 = vmax.f32 %v872_v58, %v884_v54  ;;  %v885_v13 = vmax.f32 %v869_v46, %v883_v10 }
 0x480   :  { %v886_v9 = vmax.f32 %v870_v43, %v882_v38  ;;  %v887_v29 = vmax.f32 %v871_v40, %v881_v2 }
 0x481   :  { %v889_v53 = vpack.c.bf16 %v885_v13, %v885_v13  ;;  %v892_v14 = vpack.c.bf16 %v888_v12, %v888_v12  ;;  %v961_v55 = vpop.permute.xlu0 %960 }
 0x482   :  { %v890_v42 = vpack.c.bf16 %v886_v9, %v886_v9  ;;  %v891_v15 = vpack.c.bf16 %v887_v29, %v887_v29 }
 0x483   :  { %1163 = vmatmul.bf16.vlgmr.msrb.gmra.mxu0 %v889_v53  ;;  %1202 = vmatmul.bf16.vlgmr.msrb.gmra.mxu3 %v892_v14  ;;  %v1546_v39 = vpop.permute.xlu1 %1545 }
 0x484   :  { %1176 = vmatmul.bf16.vlgmr.msrb.gmra.mxu1 %v890_v42  ;;  %1189 = vmatmul.bf16.vlgmr.msrb.gmra.mxu2 %v891_v15 }
 0x493   :  { %1475 = vmatmul.bf16.vlgmr.msra.gmra.mxu0 %v1207_v61  ;;  %1514 = vmatmul.bf16.vlgmr.msra.gmra.mxu3 %v1210_v6 }
 0x494   :  { %1488 = vmatmul.bf16.vlgmr.msra.gmra.mxu1 %v1208_v62  ;;  %1501 = vmatmul.bf16.vlgmr.msra.gmra.mxu2 %v1209_v37 }
 0x500   :  { %v1164_v49 = vpop.f32.mrf.mxu0 }
 0x501   :  { %v1165_v1 = vadd.f32 %v1164_v49, %v961_v55  ;;  %v1177_v4 = vpop.f32.mrf.mxu1 }
 0x503   :  { %v1178_v56 = vadd.f32 %v1177_v4, %v1165_v1 }
 0x506   :  { %v1203_v57 = vpop.f32.mrf.mxu3 }
 0x507   :  { %v1190_v35 = vpop.f32.mrf.mxu2 }
 0x508   :  { %v1191_v36 = vadd.f32 %v1190_v35, %v1178_v56  ;;  %v1166_v51 = vpop.f32.mrf.mxu0 }
 0x509   :  { %v1179_v44 = vpop.f32.mrf.mxu1 }
 0x50a   :  { %v1204_v16 = vadd.f32 %v1203_v57, %v1191_v36 }
 0x50e   :  { %v1205_v41 = vpop.f32.mrf.mxu3 }
 0x50f   :  { %v1192_v33 = vpop.f32.mrf.mxu2 }
 0x510   :  { %v1476_v45 = vpop.f32.mrf.mxu0 }
 0x511   :  { %v1489_v47 = vpop.f32.mrf.mxu1 }
 0x512   :  { %v1490_v22 = vadd.f32 %v1489_v47, %v1476_v45 }
 0x516   :  { %v1515_v48 = vpop.f32.mrf.mxu3 }
 0x517   :  { %v1502_v18 = vpop.f32.mrf.mxu2 }
 0x518   :  { %v1503_v11 = vadd.f32 %v1502_v18, %v1490_v22  ;;  %v1478_v63 = vpop.f32.mrf.mxu0 }
 0x519   :  { %v1491_v24 = vpop.f32.mrf.mxu1 }
 0x51a   :  { %v1516_v23 = vadd.f32 %v1515_v48, %v1503_v11 }
 0x51c   :  { %v1520_v3 = vpack.c.bf16 %v1516_v23, %v1516_v23 }
 0x51e   :  { %v1526_v20 = vsel %vm320_vm1, %v1520_v3, 0  ;;  %v1517_v32 = vpop.f32.mrf.mxu3 }
 0x51f   :  { %v1504_v28 = vpop.f32.mrf.mxu2  ;;  %1535 = vmatpush.bf16.msrb.mxu0 %v1526_v20 }
 0x522   :  { %1837 = vmatmul.msk.bf16.vlgmr.msrb.gmra.mxu0 %vm1521_vm10, %v1519_v59 }
 0x59f   :  { %v1537_v60 = vpop.f32.mrf.mxu0 }
 0x5a0   :  { %v1541_v19 = vadd.f32 %v1537_v60, %v1204_v16 }
 0x5a2   :  { %v1548_v21 = vadd.f32 %v1546_v39, %v1541_v19 }
 0x5a4   :  { %1549 = vst [vmem:[#allocation10] sm:$0xff] %v1548_v21 }
 0x5a5   :  { %1560 = dma.vmem_to_hbm [thread:$0]  %s1556_s27, 128, %s1558_s10, [#allocation4]  }
 0x5a7   :  { %v1539_v30 = vpop.f32.mrf.mxu0 }
 0x5a8   :  { %2087 = dma.done.wait [#allocation4], 128  }
 0x5a9   :  { %2088 = vsyncadd [#allocation4], 4294967168 }
 0x5aa   :  { %1565 = vsyncpa [#allocation3], 1 }
 0x5ab   :  { %1566 = vsyncpa [#allocation6], 1 }
 0x5ac   :  { %1567 = vsyncpa [#allocation9], 1 }
 0x5ad   :  { %1568 = vsyncpa [#allocation4], 1 }

</bundles_post_ra>
